<compile_context>
chip_gen: v7x
topology: tpu7x:2x2x1
jax: 0.10.0
libtpu: 0.0.40
codegen_flags: <defaults>
</compile_context>

<pallas_src>
import jax
import jax.numpy as jnp
from jax.experimental import pallas as pl
from jax.experimental.pallas import tpu as pltpu

BN_EPS = 1e-5


def _conv_bn_relu(h, w_ref, s_ref, t_ref, k):
    """Conv1d(padding='same') + folded eval-mode BatchNorm + ReLU.

    h:     (TB, L, Cin) activations (cast to bf16 for the MXU).
    w_ref: (k*Cin, Cout) bf16 im2col weight slab (tap-major, channel-minor).
    s_ref: (1, Cout) f32 scale = gamma / sqrt(var + eps).
    t_ref: (1, Cout) f32 shift = beta + scale * (conv_bias - mean).
    Returns (TB, L, Cout) f32.
    """
    TB, L, Cin = h.shape
    cout = w_ref.shape[1]
    h = h.astype(jnp.bfloat16)

    pad_l = (k - 1) // 2                       # PyTorch 'same' left/right split
    pad_r = k - 1 - pad_l
    pieces = []
    if pad_l:
        pieces.append(jnp.zeros((TB, pad_l, Cin), h.dtype))
    pieces.append(h)
    if pad_r:
        pieces.append(jnp.zeros((TB, pad_r, Cin), h.dtype))
    hp = jnp.concatenate(pieces, axis=1) if len(pieces) > 1 else h  # (TB, L+k-1, Cin)

    if Cin % 128 == 0:
        # im2col: one MXU dot with K = k*Cin (640 / 768 for conv2 / conv3):
        # accumulation over taps stays inside the MXU, no per-tap FIFO drains.
        slab = jnp.concatenate([hp[:, j:j + L, :] for j in range(k)], axis=-1)
        y = jnp.dot(slab.reshape(TB * L, k * Cin), w_ref[...],
                    preferred_element_type=jnp.float32)            # (TB*L, Cout)
    else:
        # First conv: tiny, lane-unaligned Cin -> per-tap accumulation on the
        # single zero-padded copy (no per-tap zero-copies, no narrow lane concat).
        y = jnp.zeros((TB * L, cout), jnp.float32)
        for j in range(k):                                         # static unroll
            xs = hp[:, j:j + L, :].reshape(TB * L, Cin)
            y = y + jnp.dot(xs, w_ref[pl.ds(j * Cin, Cin), :],
                            preferred_element_type=jnp.float32)

    y = jnp.maximum(y * s_ref[...] + t_ref[...], 0.0)              # BN(eval)+ReLU (f32)
    return y.reshape(TB, L, cout)


def fcn_kernel(x_ref,
               w1_ref, s1_ref, t1_ref,
               w2_ref, s2_ref, t2_ref,
               w3_ref, s3_ref, t3_ref,
               out_ref):
    h = _conv_bn_relu(x_ref[...], w1_ref, s1_ref, t1_ref, 8)       # (TB, L, 128)
    h = _conv_bn_relu(h, w2_ref, s2_ref, t2_ref, 5)                # (TB, L, 256)
    h = _conv_bn_relu(h, w3_ref, s3_ref, t3_ref, 3)                # (TB, L, 128)
    gap = jnp.mean(h, axis=1)                                      # GAP1d -> (TB, 128)
    out_ref[0] = gap.astype(out_ref.dtype)                         # lane-dense store


def _pick_tb(B, L, target_rows=512):
    """Batch-block size: aim for >=~512 MXU rows per dot, keep >=2 grid steps."""
    tb = max(1, min(B, max(1, target_rows // max(L, 1))))
    while tb > 1 and -(-B // tb) < 2:   # >=2 grid steps so both v7x TCs get work
        tb = max(1, tb // 2)
    return tb


def fcn_regressor_pallas(x_ncl, p, eps=BN_EPS, tb=None):
    B, Cin, L = x_ncl.shape
    x = jnp.transpose(x_ncl, (0, 2, 1)).astype(jnp.bfloat16)       # (B, L, Cin)

    if tb is None:
        tb = _pick_tb(B, L)
    n_blocks = -(-B // tb)
    b_pad = n_blocks * tb
    if b_pad != B:                                                 # pad batch to tile
        x = jnp.concatenate([x, jnp.zeros((b_pad - B, L, Cin), x.dtype)], axis=0)

    def pack_w(w):   # PyTorch (O, Cin, K) -> im2col slab (K*Cin, O), bf16
        o, c, k = w.shape
        return jnp.transpose(w, (2, 1, 0)).reshape(k * c, o).astype(jnp.bfloat16)

    def bn_fold(cb, g, beta, m, v):      # fold conv bias into eval-BN scale/shift
        scale = g / jnp.sqrt(v + eps)
        shift = beta + scale * (cb - m)
        return (scale.reshape(1, -1).astype(jnp.float32),
                shift.reshape(1, -1).astype(jnp.float32))

    w1 = pack_w(p["w1"]); s1, t1 = bn_fold(p["b1"], p["g1"], p["be1"], p["m1"], p["v1"])
    w2 = pack_w(p["w2"]); s2, t2 = bn_fold(p["b2"], p["g2"], p["be2"], p["m2"], p["v2"])
    w3 = pack_w(p["w3"]); s3, t3 = bn_fold(p["b3"], p["g3"], p["be3"], p["m3"], p["v3"])

    args = (x, w1, s1, t1, w2, s2, t2, w3, s3, t3)

    def full_spec(a):
        nd = a.ndim
        return pl.BlockSpec(a.shape, lambda b, _nd=nd: (0,) * _nd)

    in_specs = [pl.BlockSpec((tb, L, Cin), lambda b: (b, 0, 0))]
    in_specs += [full_spec(a) for a in args[1:]]

    gap = pl.pallas_call(
        fcn_kernel,
        out_shape=jax.ShapeDtypeStruct((n_blocks, tb, 128), jnp.float32),
        grid=(n_blocks,),
        in_specs=in_specs,
        out_specs=pl.BlockSpec((1, tb, 128), lambda b: (b, 0, 0)),
        compiler_params=pltpu.CompilerParams(
            dimension_semantics=("parallel",),
            vmem_limit_bytes=48 * 1024 * 1024),
    )(*args)

    gap = gap.reshape(b_pad, 128)[:B]                              # (B, 128) f32
    # Final Linear (128 -> out_dim) as a plain XLA GEMM; out_dim is typically 1
    # and in-kernel would force a masked 1/128-lane store per grid step.
    return gap @ p["wl"].T.astype(jnp.float32) + p["bl"][None, :].astype(jnp.float32)


def ref_forward(x, p, eps=BN_EPS):
    """Pure-JAX f32 reference matching the PyTorch module (eval-mode BN)."""
    def conv(h, w, b, k):
        lpad = (k - 1) // 2
        rpad = k - 1 - lpad
        y = jax.lax.conv_general_dilated(
            h, w, window_strides=(1,), padding=[(lpad, rpad)],
            dimension_numbers=("NCH", "OIH", "NCH"))
        return y + b[None, :, None]

    def bn(h, g, bta, m, v):
        return ((h - m[None, :, None]) / jnp.sqrt(v[None, :, None] + eps)
                * g[None, :, None] + bta[None, :, None])

    h = jax.nn.relu(bn(conv(x, p["w1"], p["b1"], 8), p["g1"], p["be1"], p["m1"], p["v1"]))
    h = jax.nn.relu(bn(conv(h, p["w2"], p["b2"], 5), p["g2"], p["be2"], p["m2"], p["v2"]))
    h = jax.nn.relu(bn(conv(h, p["w3"], p["b3"], 3), p["g3"], p["be3"], p["m3"], p["v3"]))
    gap = jnp.mean(h, axis=2)                                      # (B, 128)
    return gap @ p["wl"].T + p["bl"][None, :]


def make_params(key, in_dim, out_dim):
    ks = jax.random.split(key, 22)
    def n(i, shape, s=0.1):
        return s * jax.random.normal(ks[i], shape, jnp.float32)
    p = {
        "w1": n(0, (128, in_dim, 8)), "b1": n(1, (128,)),
        "g1": 1.0 + n(2, (128,)), "be1": n(3, (128,)),
        "m1": n(4, (128,)), "v1": 1.0 + 0.5 * jax.random.uniform(ks[5], (128,), jnp.float32),
        "w2": n(6, (256, 128, 5)), "b2": n(7, (256,)),
        "g2": 1.0 + n(8, (256,)), "be2": n(9, (256,)),
        "m2": n(10, (256,)), "v2": 1.0 + 0.5 * jax.random.uniform(ks[11], (256,), jnp.float32),
        "w3": n(12, (128, 256, 3)), "b3": n(13, (128,)),
        "g3": 1.0 + n(14, (128,)), "be3": n(15, (128,)),
        "m3": n(16, (128,)), "v3": 1.0 + 0.5 * jax.random.uniform(ks[17], (128,), jnp.float32),
        "wl": n(18, (out_dim, 128)), "bl": n(19, (out_dim,)),
    }
    return p, ks[20]


if __name__ == "__main__":
    B, in_dim, L, out_dim = 5, 4, 16, 1      # odd B exercises batch padding (3 grid steps)
    params, xkey = make_params(jax.random.PRNGKey(0), in_dim, out_dim)
    x = jax.random.normal(xkey, (B, in_dim, L), jnp.float32)   # NCL like PyTorch

    y = fcn_regressor_pallas(x, params)
    jax.block_until_ready(y)

    y_ref = ref_forward(x, params)
    assert y.shape == (B, out_dim)
    # bf16 MXU operands (f32 accumulation) -> slightly wider tolerance vs the f32 reference.
    assert jnp.allclose(y, y_ref, atol=5e-2, rtol=5e-2), (y, y_ref)
    print("KERNEL_OK")
</pallas_src>

<mosaic_0001>
module attributes {stable_mosaic.version = 11 : i64} {
  func.func @fcn_kernel(%arg0: i32, %arg1: memref<2x16x4xbf16, #tpu.memory_space<vmem>>, %arg2: memref<32x128xbf16, #tpu.memory_space<vmem>>, %arg3: memref<1x128xf32, #tpu.memory_space<vmem>>, %arg4: memref<1x128xf32, #tpu.memory_space<vmem>>, %arg5: memref<640x256xbf16, #tpu.memory_space<vmem>>, %arg6: memref<1x256xf32, #tpu.memory_space<vmem>>, %arg7: memref<1x256xf32, #tpu.memory_space<vmem>>, %arg8: memref<768x128xbf16, #tpu.memory_space<vmem>>, %arg9: memref<1x128xf32, #tpu.memory_space<vmem>>, %arg10: memref<1x128xf32, #tpu.memory_space<vmem>>, %arg11: memref<1x2x128xf32, #tpu.memory_space<vmem>>) attributes {dimension_semantics = [#tpu.dimension_semantics<parallel>], iteration_bounds = array<i64: 3>, scalar_prefetch = 0 : i64, scratch_operands = 0 : i64, tpu.core_type = #tpu.core_type<tc>, window_params = [{transform_indices = @transform_0, window_bounds = array<i64: 2, 16, 4>}, {pipeline_mode = #tpu.pipeline_mode<synchronous>, transform_indices = @transform_1, window_bounds = array<i64: 32, 128>}, {pipeline_mode = #tpu.pipeline_mode<synchronous>, transform_indices = @transform_2, window_bounds = array<i64: 1, 128>}, {pipeline_mode = #tpu.pipeline_mode<synchronous>, transform_indices = @transform_3, window_bounds = array<i64: 1, 128>}, {pipeline_mode = #tpu.pipeline_mode<synchronous>, transform_indices = @transform_4, window_bounds = array<i64: 640, 256>}, {pipeline_mode = #tpu.pipeline_mode<synchronous>, transform_indices = @transform_5, window_bounds = array<i64: 1, 256>}, {pipeline_mode = #tpu.pipeline_mode<synchronous>, transform_indices = @transform_6, window_bounds = array<i64: 1, 256>}, {pipeline_mode = #tpu.pipeline_mode<synchronous>, transform_indices = @transform_7, window_bounds = array<i64: 768, 128>}, {pipeline_mode = #tpu.pipeline_mode<synchronous>, transform_indices = @transform_8, window_bounds = array<i64: 1, 128>}, {pipeline_mode = #tpu.pipeline_mode<synchronous>, transform_indices = @transform_9, window_bounds = array<i64: 1, 128>}, {transform_indices = @transform_10, window_bounds = array<i64: 1, 2, 128>}]} {
    %c0 = arith.constant 0 : index
    %c0_0 = arith.constant 0 : index
    %c0_1 = arith.constant 0 : index
    %0 = vector.load %arg1[%c0, %c0_0, %c0_1] : memref<2x16x4xbf16, #tpu.memory_space<vmem>>, vector<2x16x4xbf16>
    %cst = arith.constant 0.000000e+00 : bf16
    %1 = vector.broadcast %cst : bf16 to vector<2x3x4xbf16>
    %cst_2 = arith.constant 0.000000e+00 : bf16
    %2 = vector.broadcast %cst_2 : bf16 to vector<2x4x4xbf16>
    %3 = tpu.concatenate %1, %0, %2 in 1 : vector<2x3x4xbf16>, vector<2x16x4xbf16>, vector<2x4x4xbf16> -> vector<2x23x4xbf16>
    %cst_3 = arith.constant 0.000000e+00 : f32
    %4 = vector.broadcast %cst_3 : f32 to vector<32x128xf32>
    %5 = vector.extract_strided_slice %3 {offsets = [0, 0, 0], sizes = [2, 16, 4], strides = [1, 1, 1]} : vector<2x23x4xbf16> to vector<2x16x4xbf16>
    %6 = vector.shape_cast %5 : vector<2x16x4xbf16> to vector<32x4xbf16>
    %c0_4 = arith.constant 0 : index
    %c0_5 = arith.constant 0 : index
    %7 = vector.load %arg2[%c0_4, %c0_5] : memref<32x128xbf16, #tpu.memory_space<vmem>>, vector<4x128xbf16>
    %cst_6 = arith.constant dense<0.000000e+00> : vector<32x128xf32>
    %8 = tpu.matmul %6, %7, %cst_6 {dimension_numbers = #tpu.dot_dimension_numbers<[1], [0], [0], [1], [0, 0, 1, 1], [], []>} : vector<32x4xbf16>, vector<4x128xbf16>, vector<32x128xf32> -> vector<32x128xf32>
    %9 = arith.addf %4, %8 : vector<32x128xf32>
    %10 = vector.extract_strided_slice %3 {offsets = [0, 1, 0], sizes = [2, 16, 4], strides = [1, 1, 1]} : vector<2x23x4xbf16> to vector<2x16x4xbf16>
    %11 = vector.shape_cast %10 : vector<2x16x4xbf16> to vector<32x4xbf16>
    %c4 = arith.constant 4 : index
    %c0_7 = arith.constant 0 : index
    %12 = vector.load %arg2[%c4, %c0_7] : memref<32x128xbf16, #tpu.memory_space<vmem>>, vector<4x128xbf16>
    %cst_8 = arith.constant dense<0.000000e+00> : vector<32x128xf32>
    %13 = tpu.matmul %11, %12, %cst_8 {dimension_numbers = #tpu.dot_dimension_numbers<[1], [0], [0], [1], [0, 0, 1, 1], [], []>} : vector<32x4xbf16>, vector<4x128xbf16>, vector<32x128xf32> -> vector<32x128xf32>
    %14 = arith.addf %9, %13 : vector<32x128xf32>
    %15 = vector.extract_strided_slice %3 {offsets = [0, 2, 0], sizes = [2, 16, 4], strides = [1, 1, 1]} : vector<2x23x4xbf16> to vector<2x16x4xbf16>
    %16 = vector.shape_cast %15 : vector<2x16x4xbf16> to vector<32x4xbf16>
    %c8 = arith.constant 8 : index
    %c0_9 = arith.constant 0 : index
    %17 = vector.load %arg2[%c8, %c0_9] : memref<32x128xbf16, #tpu.memory_space<vmem>>, vector<4x128xbf16>
    %cst_10 = arith.constant dense<0.000000e+00> : vector<32x128xf32>
    %18 = tpu.matmul %16, %17, %cst_10 {dimension_numbers = #tpu.dot_dimension_numbers<[1], [0], [0], [1], [0, 0, 1, 1], [], []>} : vector<32x4xbf16>, vector<4x128xbf16>, vector<32x128xf32> -> vector<32x128xf32>
    %19 = arith.addf %14, %18 : vector<32x128xf32>
    %20 = vector.extract_strided_slice %3 {offsets = [0, 3, 0], sizes = [2, 16, 4], strides = [1, 1, 1]} : vector<2x23x4xbf16> to vector<2x16x4xbf16>
    %21 = vector.shape_cast %20 : vector<2x16x4xbf16> to vector<32x4xbf16>
    %c12 = arith.constant 12 : index
    %c0_11 = arith.constant 0 : index
    %22 = vector.load %arg2[%c12, %c0_11] : memref<32x128xbf16, #tpu.memory_space<vmem>>, vector<4x128xbf16>
    %cst_12 = arith.constant dense<0.000000e+00> : vector<32x128xf32>
    %23 = tpu.matmul %21, %22, %cst_12 {dimension_numbers = #tpu.dot_dimension_numbers<[1], [0], [0], [1], [0, 0, 1, 1], [], []>} : vector<32x4xbf16>, vector<4x128xbf16>, vector<32x128xf32> -> vector<32x128xf32>
    %24 = arith.addf %19, %23 : vector<32x128xf32>
    %25 = vector.extract_strided_slice %3 {offsets = [0, 4, 0], sizes = [2, 16, 4], strides = [1, 1, 1]} : vector<2x23x4xbf16> to vector<2x16x4xbf16>
    %26 = vector.shape_cast %25 : vector<2x16x4xbf16> to vector<32x4xbf16>
    %c16 = arith.constant 16 : index
    %c0_13 = arith.constant 0 : index
    %27 = vector.load %arg2[%c16, %c0_13] : memref<32x128xbf16, #tpu.memory_space<vmem>>, vector<4x128xbf16>
    %cst_14 = arith.constant dense<0.000000e+00> : vector<32x128xf32>
    %28 = tpu.matmul %26, %27, %cst_14 {dimension_numbers = #tpu.dot_dimension_numbers<[1], [0], [0], [1], [0, 0, 1, 1], [], []>} : vector<32x4xbf16>, vector<4x128xbf16>, vector<32x128xf32> -> vector<32x128xf32>
    %29 = arith.addf %24, %28 : vector<32x128xf32>
    %30 = vector.extract_strided_slice %3 {offsets = [0, 5, 0], sizes = [2, 16, 4], strides = [1, 1, 1]} : vector<2x23x4xbf16> to vector<2x16x4xbf16>
    %31 = vector.shape_cast %30 : vector<2x16x4xbf16> to vector<32x4xbf16>
    %c20 = arith.constant 20 : index
    %c0_15 = arith.constant 0 : index
    %32 = vector.load %arg2[%c20, %c0_15] : memref<32x128xbf16, #tpu.memory_space<vmem>>, vector<4x128xbf16>
    %cst_16 = arith.constant dense<0.000000e+00> : vector<32x128xf32>
    %33 = tpu.matmul %31, %32, %cst_16 {dimension_numbers = #tpu.dot_dimension_numbers<[1], [0], [0], [1], [0, 0, 1, 1], [], []>} : vector<32x4xbf16>, vector<4x128xbf16>, vector<32x128xf32> -> vector<32x128xf32>
    %34 = arith.addf %29, %33 : vector<32x128xf32>
    %35 = vector.extract_strided_slice %3 {offsets = [0, 6, 0], sizes = [2, 16, 4], strides = [1, 1, 1]} : vector<2x23x4xbf16> to vector<2x16x4xbf16>
    %36 = vector.shape_cast %35 : vector<2x16x4xbf16> to vector<32x4xbf16>
    %c24 = arith.constant 24 : index
    %c0_17 = arith.constant 0 : index
    %37 = vector.load %arg2[%c24, %c0_17] : memref<32x128xbf16, #tpu.memory_space<vmem>>, vector<4x128xbf16>
    %cst_18 = arith.constant dense<0.000000e+00> : vector<32x128xf32>
    %38 = tpu.matmul %36, %37, %cst_18 {dimension_numbers = #tpu.dot_dimension_numbers<[1], [0], [0], [1], [0, 0, 1, 1], [], []>} : vector<32x4xbf16>, vector<4x128xbf16>, vector<32x128xf32> -> vector<32x128xf32>
    %39 = arith.addf %34, %38 : vector<32x128xf32>
    %40 = vector.extract_strided_slice %3 {offsets = [0, 7, 0], sizes = [2, 16, 4], strides = [1, 1, 1]} : vector<2x23x4xbf16> to vector<2x16x4xbf16>
    %41 = vector.shape_cast %40 : vector<2x16x4xbf16> to vector<32x4xbf16>
    %c28 = arith.constant 28 : index
    %c0_19 = arith.constant 0 : index
    %42 = vector.load %arg2[%c28, %c0_19] : memref<32x128xbf16, #tpu.memory_space<vmem>>, vector<4x128xbf16>
    %cst_20 = arith.constant dense<0.000000e+00> : vector<32x128xf32>
    %43 = tpu.matmul %41, %42, %cst_20 {dimension_numbers = #tpu.dot_dimension_numbers<[1], [0], [0], [1], [0, 0, 1, 1], [], []>} : vector<32x4xbf16>, vector<4x128xbf16>, vector<32x128xf32> -> vector<32x128xf32>
    %44 = arith.addf %39, %43 : vector<32x128xf32>
    %c0_21 = arith.constant 0 : index
    %c0_22 = arith.constant 0 : index
    %45 = vector.load %arg3[%c0_21, %c0_22] : memref<1x128xf32, #tpu.memory_space<vmem>>, vector<1x128xf32>
    %46 = vector.broadcast %45 : vector<1x128xf32> to vector<32x128xf32>
    %47 = arith.mulf %44, %46 : vector<32x128xf32>
    %c0_23 = arith.constant 0 : index
    %c0_24 = arith.constant 0 : index
    %48 = vector.load %arg4[%c0_23, %c0_24] : memref<1x128xf32, #tpu.memory_space<vmem>>, vector<1x128xf32>
    %49 = vector.broadcast %48 : vector<1x128xf32> to vector<32x128xf32>
    %50 = arith.addf %47, %49 : vector<32x128xf32>
    %cst_25 = arith.constant 0.000000e+00 : f32
    %51 = vector.broadcast %cst_25 : f32 to vector<32x128xf32>
    %52 = arith.maximumf %50, %51 : vector<32x128xf32>
    %53 = vector.shape_cast %52 : vector<32x128xf32> to vector<2x16x128xf32>
    %54 = arith.truncf %53 : vector<2x16x128xf32> to vector<2x16x128xbf16>
    %cst_26 = arith.constant 0.000000e+00 : bf16
    %55 = vector.broadcast %cst_26 : bf16 to vector<2x2x128xbf16>
    %cst_27 = arith.constant 0.000000e+00 : bf16
    %56 = vector.broadcast %cst_27 : bf16 to vector<2x2x128xbf16>
    %57 = tpu.concatenate %55, %54, %56 in 1 : vector<2x2x128xbf16>, vector<2x16x128xbf16>, vector<2x2x128xbf16> -> vector<2x20x128xbf16>
    %58 = vector.extract_strided_slice %57 {offsets = [0, 0, 0], sizes = [2, 16, 128], strides = [1, 1, 1]} : vector<2x20x128xbf16> to vector<2x16x128xbf16>
    %59 = vector.extract_strided_slice %57 {offsets = [0, 1, 0], sizes = [2, 16, 128], strides = [1, 1, 1]} : vector<2x20x128xbf16> to vector<2x16x128xbf16>
    %60 = vector.extract_strided_slice %57 {offsets = [0, 2, 0], sizes = [2, 16, 128], strides = [1, 1, 1]} : vector<2x20x128xbf16> to vector<2x16x128xbf16>
    %61 = vector.extract_strided_slice %57 {offsets = [0, 3, 0], sizes = [2, 16, 128], strides = [1, 1, 1]} : vector<2x20x128xbf16> to vector<2x16x128xbf16>
    %62 = vector.extract_strided_slice %57 {offsets = [0, 4, 0], sizes = [2, 16, 128], strides = [1, 1, 1]} : vector<2x20x128xbf16> to vector<2x16x128xbf16>
    %63 = tpu.concatenate %58, %59, %60, %61, %62 in 2 : vector<2x16x128xbf16>, vector<2x16x128xbf16>, vector<2x16x128xbf16>, vector<2x16x128xbf16>, vector<2x16x128xbf16> -> vector<2x16x640xbf16>
    %64 = vector.shape_cast %63 : vector<2x16x640xbf16> to vector<32x640xbf16>
    %c0_28 = arith.constant 0 : index
    %c0_29 = arith.constant 0 : index
    %65 = vector.load %arg5[%c0_28, %c0_29] : memref<640x256xbf16, #tpu.memory_space<vmem>>, vector<640x256xbf16>
    %cst_30 = arith.constant dense<0.000000e+00> : vector<32x256xf32>
    %66 = tpu.matmul %64, %65, %cst_30 {dimension_numbers = #tpu.dot_dimension_numbers<[1], [0], [0], [1], [0, 0, 1, 1], [], []>} : vector<32x640xbf16>, vector<640x256xbf16>, vector<32x256xf32> -> vector<32x256xf32>
    %c0_31 = arith.constant 0 : index
    %c0_32 = arith.constant 0 : index
    %67 = vector.load %arg6[%c0_31, %c0_32] : memref<1x256xf32, #tpu.memory_space<vmem>>, vector<1x256xf32>
    %68 = vector.broadcast %67 : vector<1x256xf32> to vector<32x256xf32>
    %69 = arith.mulf %66, %68 : vector<32x256xf32>
    %c0_33 = arith.constant 0 : index
    %c0_34 = arith.constant 0 : index
    %70 = vector.load %arg7[%c0_33, %c0_34] : memref<1x256xf32, #tpu.memory_space<vmem>>, vector<1x256xf32>
    %71 = vector.broadcast %70 : vector<1x256xf32> to vector<32x256xf32>
    %72 = arith.addf %69, %71 : vector<32x256xf32>
    %cst_35 = arith.constant 0.000000e+00 : f32
    %73 = vector.broadcast %cst_35 : f32 to vector<32x256xf32>
    %74 = arith.maximumf %72, %73 : vector<32x256xf32>
    %75 = vector.shape_cast %74 : vector<32x256xf32> to vector<2x16x256xf32>
    %76 = arith.truncf %75 : vector<2x16x256xf32> to vector<2x16x256xbf16>
    %cst_36 = arith.constant 0.000000e+00 : bf16
    %77 = vector.broadcast %cst_36 : bf16 to vector<2x1x256xbf16>
    %cst_37 = arith.constant 0.000000e+00 : bf16
    %78 = vector.broadcast %cst_37 : bf16 to vector<2x1x256xbf16>
    %79 = tpu.concatenate %77, %76, %78 in 1 : vector<2x1x256xbf16>, vector<2x16x256xbf16>, vector<2x1x256xbf16> -> vector<2x18x256xbf16>
    %80 = vector.extract_strided_slice %79 {offsets = [0, 0, 0], sizes = [2, 16, 256], strides = [1, 1, 1]} : vector<2x18x256xbf16> to vector<2x16x256xbf16>
    %81 = vector.extract_strided_slice %79 {offsets = [0, 1, 0], sizes = [2, 16, 256], strides = [1, 1, 1]} : vector<2x18x256xbf16> to vector<2x16x256xbf16>
    %82 = vector.extract_strided_slice %79 {offsets = [0, 2, 0], sizes = [2, 16, 256], strides = [1, 1, 1]} : vector<2x18x256xbf16> to vector<2x16x256xbf16>
    %83 = tpu.concatenate %80, %81, %82 in 2 : vector<2x16x256xbf16>, vector<2x16x256xbf16>, vector<2x16x256xbf16> -> vector<2x16x768xbf16>
    %84 = vector.shape_cast %83 : vector<2x16x768xbf16> to vector<32x768xbf16>
    %c0_38 = arith.constant 0 : index
    %c0_39 = arith.constant 0 : index
    %85 = vector.load %arg8[%c0_38, %c0_39] : memref<768x128xbf16, #tpu.memory_space<vmem>>, vector<768x128xbf16>
    %cst_40 = arith.constant dense<0.000000e+00> : vector<32x128xf32>
    %86 = tpu.matmul %84, %85, %cst_40 {dimension_numbers = #tpu.dot_dimension_numbers<[1], [0], [0], [1], [0, 0, 1, 1], [], []>} : vector<32x768xbf16>, vector<768x128xbf16>, vector<32x128xf32> -> vector<32x128xf32>
    %c0_41 = arith.constant 0 : index
    %c0_42 = arith.constant 0 : index
    %87 = vector.load %arg9[%c0_41, %c0_42] : memref<1x128xf32, #tpu.memory_space<vmem>>, vector<1x128xf32>
    %88 = vector.broadcast %87 : vector<1x128xf32> to vector<32x128xf32>
    %89 = arith.mulf %86, %88 : vector<32x128xf32>
    %c0_43 = arith.constant 0 : index
    %c0_44 = arith.constant 0 : index
    %90 = vector.load %arg10[%c0_43, %c0_44] : memref<1x128xf32, #tpu.memory_space<vmem>>, vector<1x128xf32>
    %91 = vector.broadcast %90 : vector<1x128xf32> to vector<32x128xf32>
    %92 = arith.addf %89, %91 : vector<32x128xf32>
    %cst_45 = arith.constant 0.000000e+00 : f32
    %93 = vector.broadcast %cst_45 : f32 to vector<32x128xf32>
    %94 = arith.maximumf %92, %93 : vector<32x128xf32>
    %95 = vector.shape_cast %94 : vector<32x128xf32> to vector<2x16x128xf32>
    %cst_46 = arith.constant dense<0.000000e+00> : vector<2x128xf32>
    %96 = vector.multi_reduction <add>, %95, %cst_46 [1] : vector<2x16x128xf32> to vector<2x128xf32>
    %cst_47 = arith.constant 1.600000e+01 : f32
    %97 = vector.broadcast %cst_47 : f32 to vector<2x128xf32>
    %98 = arith.divf %96, %97 : vector<2x128xf32>
    %c0_48 = arith.constant 0 : index
    %c0_49 = arith.constant 0 : index
    %c0_50 = arith.constant 0 : index
    %99 = vector.load %arg11[%c0_48, %c0_49, %c0_50] : memref<1x2x128xf32, #tpu.memory_space<vmem>>, vector<1x2x128xf32>
    %100 = vector.shape_cast %99 : vector<1x2x128xf32> to vector<2x128xf32>
    %101 = vector.shape_cast %98 : vector<2x128xf32> to vector<1x2x128xf32>
    tpu.vector_store %arg11[%c0_48, %c0_49, %c0_50], %101 {strides = array<i32>} : memref<1x2x128xf32, #tpu.memory_space<vmem>>, vector<1x2x128xf32>,
    return
  }
  func.func @transform_0(%arg0: i32) -> (i32, i32, i32) {
    %c0_i32 = arith.constant 0 : i32
    %c0_i32_0 = arith.constant 0 : i32
    %c0_i32_1 = arith.constant 0 : i32
    return %arg0, %c0_i32, %c0_i32_0 : i32, i32, i32
  }
  func.func @transform_1(%arg0: i32) -> (i32, i32) {
    %c0_i32 = arith.constant 0 : i32
    %c0_i32_0 = arith.constant 0 : i32
    %c0_i32_1 = arith.constant 0 : i32
    return %c0_i32, %c0_i32_0 : i32, i32
  }
  func.func @transform_2(%arg0: i32) -> (i32, i32) {
    %c0_i32 = arith.constant 0 : i32
    %c0_i32_0 = arith.constant 0 : i32
    %c0_i32_1 = arith.constant 0 : i32
    return %c0_i32, %c0_i32_0 : i32, i32
  }
  func.func @transform_3(%arg0: i32) -> (i32, i32) {
    %c0_i32 = arith.constant 0 : i32
    %c0_i32_0 = arith.constant 0 : i32
    %c0_i32_1 = arith.constant 0 : i32
    return %c0_i32, %c0_i32_0 : i32, i32
  }
  func.func @transform_4(%arg0: i32) -> (i32, i32) {
    %c0_i32 = arith.constant 0 : i32
    %c0_i32_0 = arith.constant 0 : i32
    %c0_i32_1 = arith.constant 0 : i32
    return %c0_i32, %c0_i32_0 : i32, i32
  }
  func.func @transform_5(%arg0: i32) -> (i32, i32) {
    %c0_i32 = arith.constant 0 : i32
    %c0_i32_0 = arith.constant 0 : i32
    %c0_i32_1 = arith.constant 0 : i32
    return %c0_i32, %c0_i32_0 : i32, i32
  }
  func.func @transform_6(%arg0: i32) -> (i32, i32) {
    %c0_i32 = arith.constant 0 : i32
    %c0_i32_0 = arith.constant 0 : i32
    %c0_i32_1 = arith.constant 0 : i32
    return %c0_i32, %c0_i32_0 : i32, i32
  }
  func.func @transform_7(%arg0: i32) -> (i32, i32) {
    %c0_i32 = arith.constant 0 : i32
    %c0_i32_0 = arith.constant 0 : i32
    %c0_i32_1 = arith.constant 0 : i32
    return %c0_i32, %c0_i32_0 : i32, i32
  }
  func.func @transform_8(%arg0: i32) -> (i32, i32) {
    %c0_i32 = arith.constant 0 : i32
    %c0_i32_0 = arith.constant 0 : i32
    %c0_i32_1 = arith.constant 0 : i32
    return %c0_i32, %c0_i32_0 : i32, i32
  }
  func.func @transform_9(%arg0: i32) -> (i32, i32) {
    %c0_i32 = arith.constant 0 : i32
    %c0_i32_0 = arith.constant 0 : i32
    %c0_i32_1 = arith.constant 0 : i32
    return %c0_i32, %c0_i32_0 : i32, i32
  }
  func.func @transform_10(%arg0: i32) -> (i32, i32, i32) {
    %c0_i32 = arith.constant 0 : i32
    %c0_i32_0 = arith.constant 0 : i32
    %c0_i32_1 = arith.constant 0 : i32
    return %arg0, %c0_i32, %c0_i32_0 : i32, i32, i32
  }
}

</mosaic_0001>

<bundles_post_ra>
// kernel: tpu_custom_call.1
= control target key start
LH: loop header
LB: loop body
LE: loop exit
PB: predicated region body
PF: predicated region fallthrough
CT: control target
= control target key end

     0   :  { %15 = vsyncpa [#allocation3], 0  ;;  %s3919_s0 = inlined_call_operand.vmem [shape: bf16[6,16,4], index: 0, kind: input, shape index: {}]   ;;  %s3920_s1 = inlined_call_operand.vmem [shape: bf16[32,128], index: 1, kind: input, shape index: {}]   ;;  %s3921_s2 = inlined_call_operand.vmem [shape: f32[1,128], index: 2, kind: input, shape index: {}]   ;;  %s3922_s3 = inlined_call_operand.vmem [shape: f32[1,128], index: 3, kind: input, shape index: {}]   ;;  %s3923_s4 = inlined_call_operand.hbm [shape: bf16[640,256], index: 4, kind: input, shape index: {}]   ;;  %s3924_s5 = inlined_call_operand.vmem [shape: f32[1,256], index: 5, kind: input, shape index: {}]   ;;  %s3925_s6 = inlined_call_operand.vmem [shape: f32[1,256], index: 6, kind: input, shape index: {}]   ;;  %s3926_s7 = inlined_call_operand.hbm [shape: bf16[768,128], index: 7, kind: input, shape index: {}]   ;;  %s3927_s8 = inlined_call_operand.vmem [shape: f32[1,128], index: 8, kind: input, shape index: {}]   ;;  %s3928_s9 = inlined_call_operand.vmem [shape: f32[1,128], index: 9, kind: input, shape index: {}]   ;;  %s3929_s10 = inlined_call_operand.hbm [shape: f32[3,2,128], index: 10, kind: output, shape index: {}]  }
   0x1   :  { %16 = vsyncpa [#allocation6], 0 }
   0x2   :  { %17 = vsyncpa [#allocation4], 0 }
   0x3   :  { %19 = vsyncpa [#allocation4 + $0x1], 0  ;;  %s3450_s13 = smov 0   ;;  %s3452_s14 = smov 0  }
   0x4   :  { %s3454_s15 = smov 0   ;;  %s3456_s16 = smov 0  }
   0x5 LB: > { %3937 = sst [smem:[#allocation11_spill]] %s3381_s15  ;;  %s3471_s17 = sadd.s32 4294967295, %s3385_s16   ;;  %s3385_s16 = sphi %s3456_s16, %s3959_s16   ;;  %s3381_s15 = sphi %s3454_s15, %s3961_s15   ;;  %s3377_s14 = sphi %s3452_s14, %s3963_s14   ;;  %s3373_s13 = sphi %s3450_s13, %s3962_s13  }
   0x6   : > { %s2637_s18 = sadd.s32 4294967294, %s3385_s16   ;;  %s3475_s19 = sadd.s32 1, %s3385_s16  }
   0x7   : > { %3938 = sst [smem:[#allocation12_spill]] %s3475_s19  ;;  %s247_s20 = sadd.s32 1, %s3381_s15 }
   0x8   : > { %s244_s21 = ssub.s32 %s3385_s16, %s3475_s19  ;;  %p257_p0 = scmp.ne.s32.totalorder %s3381_s15, %s3377_s14 }
   0x9   : > { %p245_p1 = scmp.eq.s32.totalorder %s244_s21, 0  ;;  %p258_p2 = scmp.eq.s32.totalorder %s3471_s17, 2 }
   0xa   : > { %p263_p3 = scmp.ne.s32.totalorder %s3377_s14, %s3373_s13  ;;  %p264_p4 = scmp.eq.s32.totalorder %s2637_s18, 2 }
   0xb   : > { %s3486_s22 = scalar_select %p245_p1, %s3381_s15, %s247_s20  }
   0xc   : > { %p3488_p5 = por %p258_p2, %p257_p0  ;;  %p3492_p6 = por %p264_p4, %p263_p3 }
   0xd   : > { %3939 = sst [smem:[#allocation13_spill]] %s3486_s22  ;;  %p2638_p7 = scmp.ge.s32.totalorder %s3385_s16, 1 }
   0xe   : > { %s3940_s23 = scalar_select %p3488_p5, 1, 0 }
   0xf   : > { %s3941_s24 = scalar_select %p3492_p6, 1, 0 }
  0x10   : > { %p271_p8 = scmp.lt.s32.totalorder %s3385_s16, 4  ;;  %p3930_p9 = scmp.eq.s32.totalorder %s3471_s17, 0 }
  0x11   : > { %3942 = sst [smem:[#allocation14_spill]] %s3941_s24  ;;  %s3387_s26 = smov [#allocation2]  }
  0x12   : > { %p3499_p10 = pnand %p2638_p7, %p271_p8  ;;  %s292_s27 = sshll.u32 %s3387_s26, 4  ;;  %s293_s27 = int_to_ptr.vmem [resolvable:$true] %s292_s27 }
  0x13   : > { %s3388_s29 = smov [#allocation5]   ;;  %s3259_s18 = scalar_lea.hbm %s3923_s4, 10240 }
  0x14   : > { %s3943_s25 = scalar_select %p3499_p10, 1, 0 }
  0x15   : > { %p3030_p11 = pneg %p3499_p10  ;;  %s311_s30 = sshll.u32 %s3388_s29, 4  ;;  %s3511_s30 = int_to_ptr.vmem [resolvable:$true] %s311_s30 }
  0x16   : > { %p3260_p13 = scmp.ne.s32.totalorder %s3923_s4, %s3259_s18  ;;  %p3266_p3 = scmp.lt.u32.totalorder %s3259_s18, %s3923_s4 }
  0x17   : > { %p3507_p12 = pnand %p3930_p9, %p3030_p11 }
  0x19   : > { %p3261_p0 = pneg %p3507_p12 }
  0x1b   : > { %p3262_p1 = pnand %p3261_p0, %p3260_p13 }
  0x1d   : > { %p3263_p2 = pneg %p3262_p1 }
  0x1f   : > { %p3268_p4 = pnand %p3266_p3, %p3263_p2 }
  0x21   : > { %3271 = shalt.err (!%p3268_p4)
}
  0x22   : > { %s3272_s29 = scalar_lea.vmem %s293_s27, 10240  ;;  %p3280_p9 = scmp.lt.s32.totalorder %s293_s27, %s293_s27 }
  0x23   : > { %p3273_p7 = scmp.ne.s32.totalorder %s293_s27, %s3272_s29  ;;  %p3281_p6 = scmp.lt.s32.totalorder %s3272_s29, %s3272_s29 }
  0x25   : > { %p3275_p8 = pnand %p3273_p7, %p3261_p0  ;;  %p3282_p5 = por %p3281_p6, %p3280_p9 }
  0x27   : > { %p3276_p11 = pneg %p3275_p8 }
  0x29   : > { %p3283_p10 = pnand %p3282_p5, %p3276_p11 }
  0x2b   : > { %3286 = shalt.err (!%p3283_p10)
}
  0x2c   : > { %s3389_s11 = smov 128   ;;  %s3390_s12 = smov 8  }
  0x2d   : > { %3033 = dma.hbm_to_vmem [thread:$0]  (!%p3507_p12), %s3923_s4, 10240, %s293_s27, [#allocation3], %s3389_s11, %s3389_s11, %s3390_s12  }
  0x2e   : > { %s3287_s26 = scalar_lea.hbm %s3926_s7, 6144 }
  0x2f   : > { %p3288_p13 = scmp.ne.s32.totalorder %s3926_s7, %s3287_s26  ;;  %p3294_p9 = scmp.lt.u32.totalorder %s3287_s26, %s3926_s7 }
  0x31   : > { %p3290_p5 = pnand %p3288_p13, %p3261_p0 }
  0x33   : > { %p3291_p6 = pneg %p3290_p5 }
  0x35   : > { %p3296_p10 = pnand %p3294_p9, %p3291_p6 }
  0x37   : > { %3299 = shalt.err (!%p3296_p10)
}
  0x38   : > { %s3300_s27 = scalar_lea.vmem %s3511_s30, 6144  ;;  %p3308_p4 = scmp.lt.s32.totalorder %s3511_s30, %s3511_s30 }
  0x39   : > { %p3301_p1 = scmp.ne.s32.totalorder %s3511_s30, %s3300_s27  ;;  %p3309_p7 = scmp.lt.s32.totalorder %s3300_s27, %s3300_s27 }
  0x3b   : > { %p3303_p2 = pnand %p3301_p1, %p3261_p0  ;;  %p3310_p8 = por %p3309_p7, %p3308_p4 }
  0x3d   : > { %p3304_p3 = pneg %p3303_p2 }
  0x3f   : > { %p3311_p11 = pnand %p3310_p8, %p3304_p3 }
  0x41   : > { %3314 = shalt.err (!%p3311_p11)
}
  0x42   : > { %s3391_s15 = smov 64   ;;  %s3392_s19 = smov 4  }
  0x43   : > { %3036 = dma.hbm_to_vmem [thread:$0]  (!%p3507_p12), %s3926_s7, 6144, %s3511_s30, [#allocation6], %s3391_s15, %s3391_s15, %s3392_s19  }
  0x44   : > { %p3945_p13 = scmp.ne.s32.totalorder %s3943_s25, 0 }
  0x45   : > { %p3946_p0 = scmp.eq.s32.totalorder (!%p3945_p13), %s3471_s17, 0 }
  0x46   : > { %343 = sbr.rel (%p3945_p13) target bundleno = 1076 (0x434), region = 60 }
  0x4d   : > { %3360 = dma.done.wait (%p3946_p0), [#allocation3], 10240   ;;  %p3947_p5 = pmov %p3946_p0 }
  0x4e   : > { %p3948_p6 = pmov %p3946_p0 }
  0x4f   : > { %3362 = vsyncadd (%p3947_p5), [#allocation3], 4294957056 }
  0x50   : > { %3364 = dma.done.wait (%p3948_p6), [#allocation6], 6144   ;;  %p3949_p9 = pmov %p3946_p0 }
  0x51   : > { %s2646_s28 = sshll.u32 %s3471_s17, 1  ;;  %vm426_vm0 = vcmask 1041408   ;;  %v3085_v0 = vld [vmem:[%s3920_s1] ss:$0 sps:$4 sm:$0xcc]   ;;  %vm464_vm4 = vcmask 31744  }
  0x52   : > { %3366 = vsyncadd (%p3949_p9), [#allocation6], 4294961152  ;;  %p387_p10 = scmp.lt.s32.totalorder %s2646_s28, 5  ;;  %vm427_vm1 = vsmask.f32 1280  ;;  %v463_v2 = vrot.slane %v3085_v0, 2 }
  0x53   : > { %v433_v6 = vld [vmem:[%s3920_s1] sm:$0x3]  ;;  %vm3583_vm2 = vmand %vm426_vm0, %vm427_vm1  ;;  %vm434_vm3 = vsmask.f32 7424  ;;  %v3091_v22 = vld [vmem:[#allocation2 + $0x4] ss:$8 sps:$4 sm:$0xff]  }
  0x54   : > { %s3965_s28 = smov (!%p387_p10, %s2646_s28), 5  ;;  %3012 = vmatprep.subr.msk.bf16.mxu0 %vm426_vm0, %v463_v2  ;;  %v473_v7 = vsel %vm426_vm0, %v463_v2, 0  ;;  %v3093_v27 = vld [vmem:[#allocation2] ss:$8 sps:$4 sm:$0xff]   ;;  %1628 = vmatprep.subr.bf16.mxu1 %v3091_v22  ;;  %v3094_v31 = vld [vmem:[#allocation2 + $0x14] ss:$8 sps:$4 sm:$0xff]  }
  0x55   : > { %s2811_s30 = sshll.u32 %s3965_s28, 3  ;;  %2921 = vmatpush3.bf16.msra.mxu0 %v473_v7  ;;  %1629 = vmatpush1.bf16.msra.mxu1 %v3093_v27  ;;  %v3096_v33 = vld [vmem:[#allocation2 + $0x10] ss:$8 sps:$4 sm:$0xff]   ;;  %v3097_v37 = vld [vmem:[#allocation2 + $0x24] ss:$8 sps:$4 sm:$0xff]   ;;  %v529_v39 = vsel %vm426_vm0, %v433_v6, 0 }
  0x56   : > { %s391_s22 = scalar_lea.vmem %s3919_s0, %s2811_s30  ;;  %3013 = vmatprep.subr.msk.bf16.mxu0 %vm426_vm0, %v433_v6  ;;  %1630 = vmatprep.subr.bf16.mxu1 %v3094_v31  ;;  %v3099_v40 = vld [vmem:[#allocation2 + $0x20] ss:$8 sps:$4 sm:$0xff]   ;;  %v591_v42 = vld [vmem:[%s3920_s1 + $0x4] sm:$0x3]  ;;  %v3100_v43 = vld [vmem:[#allocation2 + $0x34] ss:$8 sps:$4 sm:$0xff]  }
  0x57   : > { %v3086_v1 = vld [vmem:[%s391_s22] sm:$0xff]   ;;  %v3087_v5 = vld [vmem:[%s391_s22 + $0x8] sm:$0xff]   ;;  %v3102_v44 = vld [vmem:[#allocation2 + $0x30] ss:$8 sps:$4 sm:$0xff]   ;;  %vm584_vm5 = vcmask 1046528   ;;  %vm892_vm6 = vcmask 1044480  }
  0x58   : > { %v409_v3 = vshrl.u32 %v3086_v1, 16  ;;  %v412_v4 = vshll.u32 %v3086_v1, 16  ;;  %v417_v10 = vshrl.u32 %v3087_v5, 16  ;;  %v420_v12 = vshll.u32 %v3087_v5, 16  ;;  %v3103_v45 = vld [vmem:[#allocation2 + $0x44] ss:$8 sps:$4 sm:$0xff]  }
  0x59   : > { %1631 = vmatpush1.bf16.msra.mxu1 %v3096_v33  ;;  %v3643_v47 = vld [vmem:[%s3920_s1 + $0x4] ss:$0 sps:$4 sm:$0xcc]   ;;  %v3105_v55 = vld [vmem:[#allocation2 + $0x40] ss:$8 sps:$4 sm:$0xff]   ;;  %v599_v5 = vsel %vm426_vm0, %v591_v42, 0 }
  0x5a   : > { %v411_v8 = vrot.slane %v409_v3, 6  ;;  %v414_v9 = vrot.slane %v412_v4, 7  ;;  %v419_v14 = vrot.slane %v417_v10, 6  ;;  %v422_v15 = vrot.slane %v420_v12, 7  ;;  %1632 = vmatprep.subr.bf16.mxu1 %v3097_v37  ;;  %v3106_v56 = vld [vmem:[#allocation2 + $0x54] ss:$8 sps:$4 sm:$0xff]  }
  0x5b   : > { %vm962_vm7 = vsmask.f32 4352  ;;  %v3108_v4 = vld [vmem:[#allocation2 + $0x50] ss:$8 sps:$4 sm:$0xff]   ;;  %v677_v7 = vrot.slane %v3643_v47, 2  ;;  %vm740_vm9 = vcmask 1045504  }
  0x5c   : > { %v415_v13 = vor.u32 %v414_v9, %v411_v8  ;;  %v423_v21 = vor.u32 %v422_v15, %v419_v14  ;;  %v3109_v9 = vld [vmem:[#allocation2 + $0x64] ss:$8 sps:$4 sm:$0xff]   ;;  %v3690_v27 = vld [vmem:[%s3920_s1 + $0x8] ss:$0 sps:$4 sm:$0xcc]   ;;  %vm1076_vm11 = vcmask 1040384  }
  0x5d   : > { %1633 = vmatpush1.bf16.msra.mxu1 %v3099_v40  ;;  %v3114_v31 = vld [vmem:[#allocation2 + $0x70] ss:$8 sps:$4 sm:$0xff]   ;;  %v747_v37 = vld [vmem:[%s3920_s1 + $0x8] sm:$0x3]  ;;  %vm654_vm8 = vsmask.f32 6400  ;;  %vm3763_vm12 = vmneg %vm1076_vm11 }
  0x5e   : > { %v3590_v16 = vsel %vm3583_vm2, 0, %v415_v13  ;;  %v3594_v17 = vsel %vm3583_vm2, %v415_v13, 0  ;;  %v3609_v25 = vsel %vm3583_vm2, 0, %v423_v21  ;;  %v3613_v26 = vsel %vm3583_vm2, %v423_v21, 0  ;;  %1634 = vmatprep.subr.bf16.mxu1 %v3100_v43  ;;  %v3111_v13 = vld [vmem:[#allocation2 + $0x60] ss:$8 sps:$4 sm:$0xff]  }
  0x5f   : > { %v3597_v18 = vshrl.u32 %v3590_v16, 16  ;;  %v3600_v19 = vshll.u32 %v3590_v16, 16  ;;  %v3603_v20 = vshll.u32 %v3594_v17, 16  ;;  %v3616_v28 = vshrl.u32 %v3609_v25, 16  ;;  %v3112_v21 = vld [vmem:[#allocation2 + $0x74] ss:$8 sps:$4 sm:$0xff]  }
  0x60   : > { %v3619_v29 = vshll.u32 %v3609_v25, 16  ;;  %v3622_v30 = vshll.u32 %v3613_v26, 16  ;;  %v585_v46 = vrot.slane %v3590_v16, 1  ;;  %v893_v48 = vrot.slane %v3590_v16, 3  ;;  %v3118_v40 = vld [vmem:[#allocation2 + $0x94] ss:$8 sps:$4 sm:$0xff]  }
  0x61   : > { %v440_v23 = vrot.slane %v3600_v19, 1  ;;  %v445_v24 = vrot.slane %v3603_v20, 1  ;;  %v586_v49 = vrot.slane %v3594_v17, 1  ;;  %v3648_v50 = vshrl.u32 %v3594_v17, 16  ;;  %1635 = vmatpush1.bf16.msra.mxu1 %v3102_v44  ;;  %s383_s12 = sand.u32 1, %s3377_s14   ;;  %s2808_s18 = sshll.u32 %s3471_s17, 5 }
  0x62   : > { %v452_v34 = vrot.slane %v3619_v29, 1  ;;  %v457_v35 = vrot.slane %v3622_v30, 1  ;;  %v894_v51 = vrot.slane %v3594_v17, 3  ;;  %v896_v52 = vrot.slane %v3609_v25, 3  ;;  %1636 = vmatprep.subr.bf16.mxu1 %v3103_v45  ;;  %s2645_s22 = sshll.u32 %s383_s12, 1  ;;  %s3877_s27 = scalar_lea.hbm %s3929_s10, %s2808_s18 }
  0x63   : > { %v441_v32 = vor.u32 %v440_v23, %v3597_v18  ;;  %v897_v53 = vrot.slane %v3613_v26, 3  ;;  %v963_v54 = vrot.slane %v3597_v18, 3  ;;  %v3655_v57 = vshrl.u32 %v3613_v26, 16  ;;  %v3090_v47 = vld [vmem:[%s3920_s1 + $0xc] ss:$0 sps:$4 sm:$0xcc]  }
  0x64   : > { %v453_v38 = vor.u32 %v452_v34, %v3616_v28  ;;  %v3658_v58 = vsel %vm892_vm6, %v893_v48, %v894_v51  ;;  %v964_v59 = vrot.slane %v3600_v19, 4  ;;  %v966_v60 = vrot.slane %v3648_v50, 3  ;;  %v3115_v34 = vld [vmem:[#allocation2 + $0x84] ss:$8 sps:$4 sm:$0xff]   ;;  %s385_s20 = scalar_lea.vmem [#allocation7], %s2645_s22  ;;  %s2543_s15 = scalar_lea.sflag [#allocation4], %s383_s12 }
  0x65   : > { %v446_v36 = vsel %vm434_vm3, %v441_v32, %v445_v24  ;;  %v3663_v61 = vsel %vm892_vm6, %v896_v52, %v897_v53  ;;  %v967_v62 = vrot.slane %v3603_v20, 4  ;;  %v970_v63 = vrot.slane %v3616_v28, 3  ;;  %1637 = vmatpush1.bf16.msra.mxu1 %v3105_v55  ;;  %v899_v52 = vld [vmem:[%s3920_s1 + $0xc] sm:$0x3]  ;;  %v3120_v53 = vld [vmem:[#allocation2 + $0x90] ss:$8 sps:$4 sm:$0xff]  }
  0x66   : > { %2922 = vmatprep.mubr.msk.bf16.mxu0 %vm464_vm4, %v446_v36  ;;  %v458_v41 = vsel %vm434_vm3, %v453_v38, %v457_v35  ;;  %v965_v0 = vor.u32 %v964_v59, %v963_v54  ;;  %v971_v1 = vrot.slane %v3619_v29, 4  ;;  %v973_v2 = vrot.slane %v3655_v57, 3  ;;  %1638 = vmatprep.subr.bf16.mxu1 %v3106_v56  ;;  %v3117_v38 = vld [vmem:[#allocation2 + $0x80] ss:$8 sps:$4 sm:$0xff]   ;;  %v3121_v59 = vld [vmem:[#allocation2 + $0xa4] ss:$8 sps:$4 sm:$0xff]  }
  0x67   : > { %2923 = vmatmul.mubr.msk.bf16.vlgmr.msra.gmra.mrb[0].mxu0 %vm464_vm4, %v458_v41  ;;  %v974_v3 = vrot.slane %v3622_v30, 4  ;;  %v587_v6 = vsel %vm584_vm5, %v585_v46, %v586_v49  ;;  %v968_v8 = vor.u32 %v967_v62, %v966_v60  ;;  %v655_v14 = vrot.slane %v3597_v18, 1  ;;  %s2556_s21 = sshll.u32 %s385_s20, 4  ;;  %p3956_p1 = scmp.ne.s32.totalorder %s3940_s23, 0  ;;  %s3879_s21 = int_to_ptr.vmem [resolvable:$true] %s2556_s21 }
  0x68   : > { %2927 = vmatpush3.bf16.msra.mxu0 %v529_v39  ;;  %2928 = vmatprep.mubr.msk.bf16.mxu0 %vm464_vm4, %v3590_v16  ;;  %v972_v10 = vor.u32 %v971_v1, %v970_v63  ;;  %v656_v22 = vrot.slane %v3600_v19, 2  ;;  %v660_v23 = vrot.slane %v3648_v50, 1  ;;  %v661_v24 = vrot.slane %v3603_v20, 2  ;;  %s3315_s19 = scalar_lea.vmem %s3879_s21, 32  ;;  %s3394_s17 = smov [#allocation7]  }
  0x69   : > { %3014 = vmatprep.subr.msk.bf16.mxu0 %vm426_vm0, %v591_v42  ;;  %v975_v11 = vor.u32 %v974_v3, %v973_v2  ;;  %v3676_v12 = vsel %vm962_vm7, %v965_v0, %v968_v8  ;;  %1639 = vmatpush1.bf16.msra.mxu1 %v3108_v4  ;;  %v588_v32 = vrot.slane %v3609_v25, 1  ;;  %v589_v33 = vrot.slane %v3613_v26, 1  ;;  %v3123_v2 = vld [vmem:[#allocation2 + $0xa0] ss:$8 sps:$4 sm:$0xff]   ;;  %p3316_p12 = scmp.ne.s32.totalorder %s3879_s21, %s3315_s19  ;;  %s3319_s24 = sshll.u32 %s3394_s17, 4  ;;  %s3320_s24 = int_to_ptr.vmem [resolvable:$false] %s3319_s24 }
  0x6a   : > { %1640 = vmatprep.subr.bf16.mxu1 %v3109_v9  ;;  %v657_v35 = vor.u32 %v656_v22, %v655_v14  ;;  %v662_v36 = vor.u32 %v661_v24, %v660_v23  ;;  %v685_v41 = vsel %vm426_vm0, %v677_v7, 0  ;;  %v829_v43 = vrot.slane %v3690_v27, 2  ;;  %v3124_v9 = vld [vmem:[#allocation2 + $0xb4] ss:$8 sps:$4 sm:$0xff]   ;;  %v3132_v14 = vld [vmem:[#allocation2 + $0xd0] ss:$8 sps:$4 sm:$0xff]   ;;  %p3322_p4 = scmp.lt.s32.totalorder %s3879_s21, %s3320_s24 }
  0x6b   : > { %v3681_v15 = vsel %vm962_vm7, %v972_v10, %v975_v11  ;;  %v590_v39 = vsel %vm584_vm5, %v588_v32, %v589_v33  ;;  %v664_v44 = vrot.slane %v3616_v28, 1  ;;  %v665_v45 = vrot.slane %v3619_v29, 2  ;;  %v3126_v10 = vld [vmem:[#allocation2 + $0xb0] ss:$8 sps:$4 sm:$0xff]   ;;  %v3127_v11 = vld [vmem:[#allocation2 + $0xc4] ss:$8 sps:$4 sm:$0xff]   ;;  %p3317_p2 = pnand %p3316_p12, %p3956_p1 }
  0x6c   : > { %v663_v42 = vsel %vm654_vm8, %v657_v35, %v662_v36  ;;  %v755_v46 = vsel %vm426_vm0, %v747_v37, 0  ;;  %v670_v48 = vrot.slane %v3622_v30, 2  ;;  %v741_v49 = vrot.slane %v3590_v16, 2  ;;  %v3136_v22 = vld [vmem:[#allocation2 + $0xf4] ss:$8 sps:$4 sm:$0xff]   ;;  %v3211_v24 = vld [vmem:[#allocation5 + $0x40] sm:$0xff]  }
  0x6d   : > { %1641 = vmatpush1.bf16.msra.mxu1 %v3111_v13  ;;  %v742_v51 = vrot.slane %v3594_v17, 2  ;;  %v669_v54 = vrot.slane %v3655_v57, 1  ;;  %v744_v55 = vrot.slane %v3609_v25, 2  ;;  %v745_v56 = vrot.slane %v3613_v26, 2  ;;  %v3130_v13 = vld [vmem:[#allocation2 + $0xd4] ss:$8 sps:$4 sm:$0xff]   ;;  %p3318_p3 = pneg %p3317_p2 }
  0x6e   : > { %1642 = vmatprep.subr.bf16.mxu1 %v3112_v21  ;;  %v837_v16 = vsel %vm426_vm0, %v829_v43, 0  ;;  %v811_v17 = vrot.slane %v3597_v18, 2  ;;  %v812_v60 = vrot.slane %v3600_v19, 3  ;;  %v814_v62 = vrot.slane %v3648_v50, 2  ;;  %v3135_v21 = vld [vmem:[#allocation2 + $0xe0] ss:$8 sps:$4 sm:$0xff]  }
  0x6f   : > { %v815_v63 = vrot.slane %v3603_v20, 3  ;;  %v818_v0 = vrot.slane %v3616_v28, 2  ;;  %v821_v26 = vrot.slane %v3655_v57, 2  ;;  %v822_v1 = vrot.slane %v3622_v30, 3  ;;  %v2671_v23 = vld [vmem:[%s3921_s2] ss:$0 sm:$0xff] }
  0x70   : > { %v666_v3 = vor.u32 %v665_v45, %v664_v44  ;;  %v671_v4 = vor.u32 %v670_v48, %v669_v54  ;;  %v907_v18 = vsel %vm426_vm0, %v899_v52, 0  ;;  %v981_v19 = vrot.slane %v3090_v47, 2  ;;  %v3212_v27 = vld [vmem:[#allocation5] sm:$0xff]   ;;  %v3216_v47 = vld [vmem:[#allocation5 + $0x10] sm:$0xff]   ;;  %s3321_s11 = scalar_lea.vmem %s3320_s24, 64 }
  0x71   : > { %1643 = vmatpush1.bf16.msra.mxu1 %v3114_v31  ;;  %v743_v20 = vsel %vm740_vm9, %v741_v49, %v742_v51  ;;  %vm810_vm10 = vsmask.f32 5376  ;;  %v813_v28 = vor.u32 %v812_v60, %v811_v17  ;;  %v746_v30 = vsel %vm740_vm9, %v744_v55, %v745_v56  ;;  %v3213_v31 = vld [vmem:[#allocation5 + $0x48] sm:$0xff]   ;;  %v2672_v33 = vld [vmem:[%s3922_s3] ss:$0 sm:$0xff]  ;;  %v3217_v51 = vld [vmem:[#allocation5 + $0x58] sm:$0xff]   ;;  %p3323_p7 = scmp.lt.s32.totalorder %s3321_s11, %s3315_s19 }
  0x72   : > { %1644 = vmatprep.subr.bf16.mxu1 %v3115_v34  ;;  %v672_v50 = vsel %vm654_vm8, %v666_v3, %v671_v4  ;;  %v989_v8 = vsel %vm426_vm0, %v981_v19, 0  ;;  %vm1876_vm13 = vsmask.f32 256  ;;  %vm2538_vm15 = vcmask 1041409  }
  0x73   : > { %2929 = vmatmul.mubr.msk.bf16.vlgmr.msra.gmra.mrb[0].mxu0 %vm464_vm4, %v3609_v25  ;;  %v819_v25 = vrot.slane %v3619_v29, 3  ;;  %v816_v29 = vor.u32 %v815_v63, %v814_v62  ;;  %vm3801_vm14 = vmand %vm1076_vm11, %vm1876_vm13  ;;  %p3324_p8 = por %p3323_p7, %p3322_p4 }
  0x74   : > { %2933 = vmatpush3.bf16.msra.mxu0 %v599_v5  ;;  %2934 = vmatprep.mubr.msk.bf16.mxu0 %vm464_vm4, %v587_v6  ;;  %v823_v6 = vor.u32 %v822_v1, %v821_v26 }
  0x75   : > { %3015 = vmatprep.subr.msk.bf16.mxu0 %vm426_vm0, %v677_v7  ;;  %1645 = vmatpush1.bf16.msra.mxu1 %v3117_v38  ;;  %v817_v57 = vsel %vm810_vm10, %v813_v28, %v816_v29  ;;  %v820_v5 = vor.u32 %v819_v25, %v818_v0  ;;  %v3214_v38 = vld [vmem:[#allocation5 + $0x8] sm:$0xff]   ;;  %p3325_p11 = pnand %p3324_p8, %p3318_p3 }
  0x76   : > { %1646 = vmatprep.subr.bf16.mxu1 %v3118_v40 }
  0x77   : > { %v824_v7 = vsel %vm810_vm10, %v820_v5, %v823_v6 }
  0x79   : > { %1647 = vmatpush1.bf16.msra.mxu1 %v3120_v53 }
  0x7a   : > { %1648 = vmatprep.subr.bf16.mxu1 %v3121_v59 }
  0x7d   : > { %1649 = vmatpush1.bf16.msra.mxu1 %v3123_v2 }
  0x7e   : > { %1650 = vmatprep.subr.bf16.mxu1 %v3124_v9 }
  0x7f   : > { %2935 = vmatmul.mubr.msk.bf16.vlgmr.msra.gmra.mrb[0].mxu0 %vm464_vm4, %v590_v39 }
  0x80   : > { %2939 = vmatpush3.bf16.msra.mxu0 %v685_v41  ;;  %2940 = vmatprep.mubr.msk.bf16.mxu0 %vm464_vm4, %v663_v42  ;;  %v3215_v42 = vld [vmem:[#allocation5 + $0x50] sm:$0xff]  }
  0x81   : > { %3016 = vmatprep.subr.msk.bf16.mxu0 %vm426_vm0, %v747_v37  ;;  %1651 = vmatpush1.bf16.msra.mxu1 %v3126_v10 }
  0x82   : > { %1652 = vmatprep.subr.bf16.mxu1 %v3127_v11 }
  0x8b   : > { %2941 = vmatmul.mubr.msk.bf16.vlgmr.msra.gmra.mrb[0].mxu0 %vm464_vm4, %v672_v50 }
  0x8c   : > { %2945 = vmatpush3.bf16.msra.mxu0 %v755_v46  ;;  %2946 = vmatprep.mubr.msk.bf16.mxu0 %vm464_vm4, %v743_v20 }
  0x8d   : > { %3017 = vmatprep.subr.msk.bf16.mxu0 %vm426_vm0, %v829_v43 }
  0x97   : > { %2947 = vmatmul.mubr.msk.bf16.vlgmr.msra.gmra.mrb[0].mxu0 %vm464_vm4, %v746_v30 }
  0x98   : > { %2951 = vmatpush3.bf16.msra.mxu0 %v837_v16  ;;  %2952 = vmatprep.mubr.msk.bf16.mxu0 %vm464_vm4, %v817_v57 }
  0x99   : > { %3018 = vmatprep.subr.msk.bf16.mxu0 %vm426_vm0, %v899_v52 }
  0xa3   : > { %2953 = vmatmul.mubr.msk.bf16.vlgmr.msra.gmra.mrb[0].mxu0 %vm464_vm4, %v824_v7  ;;  %v3139_v7 = vld [vmem:[#allocation2 + $0x100] ss:$8 sps:$4 sm:$0xff]  }
  0xa4   : > { %2957 = vmatpush3.bf16.msra.mxu0 %v907_v18  ;;  %2958 = vmatprep.mubr.msk.bf16.mxu0 %vm464_vm4, %v3658_v58  ;;  %v3129_v58 = vld [vmem:[#allocation2 + $0xc0] ss:$8 sps:$4 sm:$0xff]  }
  0xa5   : > { %3019 = vmatprep.subr.msk.bf16.mxu0 %vm426_vm0, %v981_v19  ;;  %1653 = vmatpush1.bf16.msra.mxu1 %v3129_v58 }
  0xa6   : > { %1654 = vmatprep.subr.bf16.mxu1 %v3130_v13 }
  0xa9   : > { %1655 = vmatpush1.bf16.msra.mxu1 %v3132_v14  ;;  %v3144_v14 = vld [vmem:[#allocation2 + $0x114] ss:$8 sps:$4 sm:$0xff]  }
  0xaf   : > { %2959 = vmatmul.mubr.msk.bf16.vlgmr.msra.gmra.mrb[0].mxu0 %vm464_vm4, %v3663_v61  ;;  %v3133_v61 = vld [vmem:[#allocation2 + $0xe4] ss:$8 sps:$4 sm:$0xff]  }
  0xb0   : > { %2963 = vmatpush3.bf16.msra.mxu0 %v989_v8  ;;  %2964 = vmatprep.mubr.msk.bf16.mxu0 %vm464_vm4, %v3676_v12  ;;  %v3138_v12 = vld [vmem:[#allocation2 + $0xf0] ss:$8 sps:$4 sm:$0xff]   ;;  %v3393_v8 = vmov 0  }
  0xb1   : > { %1656 = vmatprep.subr.bf16.mxu1 %v3133_v61  ;;  %2836 = vmatprep.subr.bf16.mxu0 %v3211_v24 }
  0xb2   : > { %1657 = vmatpush1.bf16.msra.mxu1 %v3135_v21 }
  0xb3   : > { %1658 = vmatprep.subr.bf16.mxu1 %v3136_v22 }
  0xb6   : > { %1659 = vmatpush1.bf16.msra.mxu1 %v3138_v12 }
  0xbb   : > { %2965 = vmatmul.mubr.msk.bf16.vlgmr.msra.gmra.mrb[0].mxu0 %vm464_vm4, %v3681_v15  ;;  %v3141_v15 = vld [vmem:[#allocation2 + $0x104] ss:$8 sps:$4 sm:$0xff]  }
  0xbc   : > { %1681 = vmatprep.subr.bf16.mxu1 %v3141_v15  ;;  %2837 = vmatpush3.bf16.msra.mxu0 %v3212_v27 }
  0xbd   : > { %2838 = vmatprep.subr.bf16.mxu0 %v3213_v31 }
  0xc0   : > { %2839 = vmatpush3.bf16.msra.mxu0 %v3214_v38 }
  0xc1   : > { %2840 = vmatprep.subr.bf16.mxu0 %v3215_v42 }
  0xc4   : > { %2841 = vmatpush3.bf16.msra.mxu0 %v3216_v47  ;;  %v3153_v47 = vld [vmem:[#allocation2 + $0x144] ss:$8 sps:$4 sm:$0xff]  }
  0xc5   : > { %2842 = vmatprep.subr.bf16.mxu0 %v3217_v51  ;;  %v3154_v51 = vld [vmem:[#allocation2 + $0x150] ss:$8 sps:$4 sm:$0xff]  }
 0x18e   : > { %v2966_v32 = vpop.f32.mrb[0].mxu0 }
 0x18f   : > { %v1053_v34 = vmul.f32 %v2966_v32, %v2671_v23  ;;  %v1025_v35 = vpop.f32.mrb[1].mxu0 }
 0x190   : > { %v1051_v36 = vmul.f32 %v2671_v23, %v1025_v35  ;;  %v2967_v37 = vpop.f32.mrb[2].mxu0 }
 0x191   : > { %v1064_v39 = vadd.f32 %v2672_v33, %v1053_v34  ;;  %v1054_v40 = vmul.f32 %v2967_v37, %v2671_v23  ;;  %v1028_v41 = vpop.f32.mrb[3].mxu0  ;;  %v3142_v34 = vld [vmem:[#allocation2 + $0x110] ss:$8 sps:$4 sm:$0xff]   ;;  %v3147_v37 = vld [vmem:[#allocation2 + $0x124] ss:$8 sps:$4 sm:$0xff]  }
 0x192   : > { %v1062_v43 = vadd.f32 %v2672_v33, %v1051_v36  ;;  %v1052_v44 = vmul.f32 %v2671_v23, %v1028_v41 }
 0x193   : > { %v1065_v45 = vadd.f32 %v2672_v33, %v1054_v40  ;;  %v1068_v48 = vmax.f32 %v1064_v39, 0.0 }
 0x194   : > { %v1063_v46 = vadd.f32 %v2672_v33, %v1052_v44  ;;  %v1066_v52 = vmax.f32 %v1062_v43, 0.0  ;;  %v3145_v43 = vld [vmem:[#allocation2 + $0x120] ss:$8 sps:$4 sm:$0xff]   ;;  %v3150_v44 = vld [vmem:[#allocation2 + $0x134] ss:$8 sps:$4 sm:$0xff]  }
 0x195   : > { %v1069_v49 = vmax.f32 %v1065_v45, 0.0 }
 0x196   : > { %v1067_v53 = vmax.f32 %v1063_v46, 0.0  ;;  %v3148_v46 = vld [vmem:[#allocation2 + $0x130] ss:$8 sps:$4 sm:$0xff]  }
 0x197   : > { %v1071_v54 = vpack.c.bf16 %v1069_v49, %v1068_v48  ;;  %v3151_v48 = vld [vmem:[#allocation2 + $0x140] ss:$8 sps:$4 sm:$0xff]   ;;  %v3156_v49 = vld [vmem:[#allocation2 + $0x154] ss:$8 sps:$4 sm:$0xff]  }
 0x198   : > { %v1070_v55 = vpack.c.bf16 %v1067_v53, %v1066_v52  ;;  %v3159_v52 = vld [vmem:[#allocation2 + $0x164] ss:$8 sps:$4 sm:$0xff]   ;;  %v3157_v53 = vld [vmem:[#allocation2 + $0x160] ss:$8 sps:$4 sm:$0xff]  }
 0x199   : > { %v1075_v56 = vrot.slane %v1071_v54, 7  ;;  %v3162_v54 = vld [vmem:[#allocation2 + $0x174] ss:$8 sps:$4 sm:$0xff]  }
 0x19a   : > { %v1074_v59 = vrot.slane %v1070_v55, 7  ;;  %v3160_v55 = vld [vmem:[#allocation2 + $0x170] ss:$8 sps:$4 sm:$0xff]  }
 0x19b   : > { %v1082_v16 = vsel %vm1076_vm11, 0, %v1075_v56  ;;  %v1085_v17 = vsel %vm1076_vm11, %v1075_v56, 0 }
 0x19c   : > { %v1079_v60 = vsel %vm1076_vm11, 0, %v1074_v59  ;;  %v1084_v62 = vsel %vm1076_vm11, %v1074_v59, 0  ;;  %v1096_v63 = vshrl.u32 %v1082_v16, 16  ;;  %v1098_v0 = vshll.u32 %v1082_v16, 16 }
 0x19d   : > { %v1086_v25 = vshrl.u32 %v1079_v60, 16  ;;  %v1088_v26 = vshll.u32 %v1079_v60, 16  ;;  %v1092_v1 = vshll.u32 %v1084_v62, 16  ;;  %v1102_v2 = vshll.u32 %v1085_v17, 16 }
 0x19e   : > { %v1100_v3 = vrot.slane %v1098_v0, 1  ;;  %v1123_v4 = vshrl.u32 %v1084_v62, 16  ;;  %v1112_v18 = vrot.slane %v1079_v60, 1  ;;  %v1113_v19 = vrot.slane %v1084_v62, 1 }
 0x19f   : > { %v1090_v50 = vrot.slane %v1088_v26, 1  ;;  %v1094_v20 = vrot.slane %v1092_v1, 1  ;;  %v1104_v29 = vrot.slane %v1102_v2, 1  ;;  %v1129_v5 = vrot.slane %v1096_v63, 1 }
 0x1a0   : > { %v1101_v28 = vor.u32 %v1100_v3, %v1096_v63  ;;  %v3760_v57 = vsel %vm584_vm5, %v1112_v18, %v1113_v19  ;;  %v1130_v6 = vrot.slane %v1098_v0, 2  ;;  %v1120_v9 = vrot.slane %v1086_v25, 1  ;;  %v3174_v63 = vld [vmem:[#allocation2 + $0x1b4] ss:$8 sps:$4 sm:$0xff]   ;;  %v3172_v0 = vld [vmem:[#allocation2 + $0x1b0] ss:$8 sps:$4 sm:$0xff]  }
 0x1a1   : > { %v1091_v30 = vor.u32 %v1090_v50, %v1086_v25  ;;  %v1121_v10 = vrot.slane %v1088_v26, 2  ;;  %v1125_v11 = vrot.slane %v1123_v4, 1  ;;  %v1132_v58 = vshrl.u32 %v1085_v17, 16  ;;  %v3177_v25 = vld [vmem:[#allocation2 + $0x1c4] ss:$8 sps:$4 sm:$0xff]  }
 0x1a2   : > { %v1131_v61 = vor.u32 %v1130_v6, %v1129_v5  ;;  %v1135_v21 = vrot.slane %v1102_v2, 2  ;;  %v1115_v22 = vrot.slane %v1082_v16, 1  ;;  %v1126_v12 = vrot.slane %v1092_v1, 2  ;;  %v3175_v26 = vld [vmem:[#allocation2 + $0x1c0] ss:$8 sps:$4 sm:$0xff]  }
 0x1a3   : > { %v1095_v13 = vsel %vm434_vm3, %v1091_v30, %v1094_v20  ;;  %v1134_v15 = vrot.slane %v1132_v58, 1  ;;  %v1116_v23 = vrot.slane %v1085_v17, 1  ;;  %v1140_v24 = vrot.slane %v1079_v60, 2  ;;  %v3171_v60 = vld [vmem:[#allocation2 + $0x1a4] ss:$8 sps:$4 sm:$0xff]  }
 0x1a4   : > { %1660 = vmatprep.mubr.bf16.mxu1 %v1095_v13  ;;  %v1105_v27 = vsel %vm434_vm3, %v1101_v28, %v1104_v29  ;;  %v1141_v31 = vrot.slane %v1084_v62, 2  ;;  %v1143_v32 = vrot.slane %v1082_v16, 2  ;;  %v1144_v33 = vrot.slane %v1085_v17, 2  ;;  %v3168_v16 = vld [vmem:[#allocation2 + $0x194] ss:$8 sps:$4 sm:$0xff]  }
 0x1a5   : > { %2754 = vmatmul.mubr.msk.bf16.vlgmr.msra.gmra.mrb[0].mxu1 %vm3763_vm12, %v1074_v59  ;;  %v1136_v35 = vor.u32 %v1135_v21, %v1134_v15  ;;  %v3772_v36 = vsel %vm584_vm5, %v1115_v22, %v1116_v23  ;;  %v1122_v41 = vor.u32 %v1121_v10, %v1120_v9  ;;  %v1127_v42 = vor.u32 %v1126_v12, %v1125_v11  ;;  %v3163_v59 = vld [vmem:[#allocation2 + $0x180] ss:$8 sps:$4 sm:$0xff]   ;;  %v3166_v17 = vld [vmem:[#allocation2 + $0x190] ss:$8 sps:$4 sm:$0xff]   ;;  %v3180_v1 = vld [vmem:[#allocation2 + $0x1d4] ss:$8 sps:$4 sm:$0xff]  }
 0x1a6   : > { %1682 = vmatpush1.bf16.msra.mxu1 %v3139_v7  ;;  %1670 = vmatprep.mubr.bf16.mxu1 %v1105_v27  ;;  %v3775_v38 = vsel %vm740_vm9, %v1140_v24, %v1141_v31  ;;  %v3778_v39 = vsel %vm740_vm9, %v1143_v32, %v1144_v33  ;;  %v3169_v62 = vld [vmem:[#allocation2 + $0x1a0] ss:$8 sps:$4 sm:$0xff]   ;;  %v3178_v2 = vld [vmem:[#allocation2 + $0x1d0] ss:$8 sps:$4 sm:$0xff]   ;;  %v3183_v3 = vld [vmem:[#allocation2 + $0x1e4] ss:$8 sps:$4 sm:$0xff]  }
 0x1a7   : > { %1683 = vmatprep.subr.bf16.mxu1 %v3144_v14  ;;  %v3781_v40 = vsel %vm654_vm8, %v1131_v61, %v1136_v35  ;;  %v1128_v45 = vsel %vm654_vm8, %v1122_v41, %v1127_v42  ;;  %v3181_v4 = vld [vmem:[#allocation2 + $0x1e0] ss:$8 sps:$4 sm:$0xff]   ;;  %v3186_v18 = vld [vmem:[#allocation2 + $0x1f4] ss:$8 sps:$4 sm:$0xff]   ;;  %v3184_v19 = vld [vmem:[#allocation2 + $0x1f0] ss:$8 sps:$4 sm:$0xff]  }
 0x1a8   : > { %v3189_v50 = vld [vmem:[#allocation2 + $0x204] ss:$8 sps:$4 sm:$0xff]   ;;  %v3187_v20 = vld [vmem:[#allocation2 + $0x200] ss:$8 sps:$4 sm:$0xff]   ;;  %v3192_v28 = vld [vmem:[#allocation2 + $0x214] ss:$8 sps:$4 sm:$0xff]  }
 0x1a9   : > { %v3190_v29 = vld [vmem:[#allocation2 + $0x210] ss:$8 sps:$4 sm:$0xff]   ;;  %v3195_v30 = vld [vmem:[#allocation2 + $0x224] ss:$8 sps:$4 sm:$0xff]   ;;  %v3193_v5 = vld [vmem:[#allocation2 + $0x220] ss:$8 sps:$4 sm:$0xff]  }
 0x1aa   : > { %1684 = vmatpush1.bf16.msra.mxu1 %v3142_v34  ;;  %v3198_v6 = vld [vmem:[#allocation2 + $0x234] ss:$8 sps:$4 sm:$0xff]   ;;  %v3196_v7 = vld [vmem:[#allocation2 + $0x230] ss:$8 sps:$4 sm:$0xff]   ;;  %v3201_v9 = vld [vmem:[#allocation2 + $0x244] ss:$8 sps:$4 sm:$0xff]   ;;  %v1789_v34 = vlaneseq }
 0x1ab   : > { %1685 = vmatprep.subr.bf16.mxu1 %v3147_v37  ;;  %v3204_v10 = vld [vmem:[#allocation2 + $0x254] ss:$8 sps:$4 sm:$0xff]   ;;  %v3202_v11 = vld [vmem:[#allocation2 + $0x250] ss:$8 sps:$4 sm:$0xff]   ;;  %v3207_v58 = vld [vmem:[#allocation2 + $0x264] ss:$8 sps:$4 sm:$0xff]  }
 0x1ac   : > { %v3205_v13 = vld [vmem:[#allocation2 + $0x260] ss:$8 sps:$4 sm:$0xff]   ;;  %v3210_v14 = vld [vmem:[#allocation2 + $0x274] ss:$8 sps:$4 sm:$0xff]   ;;  %v3208_v61 = vld [vmem:[#allocation2 + $0x270] ss:$8 sps:$4 sm:$0xff]  }
 0x1ad   : > { %2756 = vmatmul.mubr.msk.bf16.gmra.mrb[4].mxu1 %vm3763_vm12, %v1075_v56  ;;  %v3165_v56 = vld [vmem:[#allocation2 + $0x184] ss:$8 sps:$4 sm:$0xff]   ;;  %v3218_v21 = vld [vmem:[#allocation5 + $0x18] sm:$0xff]   ;;  %v3223_v24 = vld [vmem:[#allocation5 + $0x70] sm:$0xff]   ;;  %v1790_v35 = vshrl.u32 %v1789_v34, 7 }
 0x1ae   : > { %1686 = vmatpush1.bf16.msra.mxu1 %v3145_v43  ;;  %1713 = vmatprep.mubr.bf16.mxu1 %v1128_v45  ;;  %v3219_v22 = vld [vmem:[#allocation5 + $0x60] sm:$0xff]   ;;  %v3221_v15 = vld [vmem:[#allocation5 + $0x68] sm:$0xff]   ;;  %v3224_v27 = vld [vmem:[#allocation5 + $0x30] sm:$0xff]  }
 0x1af   : > { %1687 = vmatprep.subr.bf16.mxu1 %v3150_v44  ;;  %2843 = vmatpush3.bf16.msra.mxu0 %v3218_v21  ;;  %v3220_v12 = vld [vmem:[#allocation5 + $0x20] sm:$0xff]   ;;  %v3222_v23 = vld [vmem:[#allocation5 + $0x28] sm:$0xff]   ;;  %v3225_v31 = vld [vmem:[#allocation5 + $0x78] sm:$0xff]  }
 0x1b0   : > { %2844 = vmatprep.subr.bf16.mxu0 %v3219_v22  ;;  %v3226_v32 = vld [vmem:[#allocation5 + $0x38] sm:$0xff]   ;;  %v3227_v33 = vld [vmem:[#allocation5 + $0xc0] sm:$0xff]  }
 0x1b1   : > { %v1787_v37 = vld [vmem:[%s3924_s5] sm:$0x3] }
 0x1b2   : > { %1688 = vmatpush1.bf16.msra.mxu1 %v3148_v46  ;;  %v3228_v21 = vld [vmem:[#allocation5 + $0x80] sm:$0xff]  }
 0x1b3   : > { %1689 = vmatprep.subr.bf16.mxu1 %v3153_v47  ;;  %2845 = vmatpush3.bf16.msra.mxu0 %v3220_v12 }
 0x1b4   : > { %2846 = vmatprep.subr.bf16.mxu0 %v3221_v15  ;;  %v3229_v15 = vld [vmem:[#allocation5 + $0xc8] sm:$0xff]  }
 0x1b6   : > { %1690 = vmatpush1.bf16.msra.mxu1 %v3151_v48 }
 0x1b7   : > { %1691 = vmatprep.subr.bf16.mxu1 %v3156_v49  ;;  %2847 = vmatpush3.bf16.msra.mxu0 %v3222_v23 }
 0x1b8   : > { %2848 = vmatprep.subr.bf16.mxu0 %v3223_v24 }
 0x1ba   : > { %1692 = vmatpush1.bf16.msra.mxu1 %v3154_v51 }
 0x1bb   : > { %1693 = vmatprep.subr.bf16.mxu1 %v3159_v52  ;;  %2849 = vmatpush3.bf16.msra.mxu0 %v3224_v27 }
 0x1bc   : > { %2850 = vmatprep.subr.bf16.mxu0 %v3225_v31 }
 0x1be   : > { %1694 = vmatpush1.bf16.msra.mxu1 %v3157_v53 }
 0x1bf   : > { %1695 = vmatprep.subr.bf16.mxu1 %v3162_v54  ;;  %2851 = vmatpush3.bf16.msra.mxu0 %v3226_v32 }
 0x1c0   : > { %2864 = vmatprep.subr.bf16.mxu0 %v3227_v33 }
 0x1c2   : > { %1696 = vmatpush1.bf16.msra.mxu1 %v3160_v55 }
 0x1c3   : > { %1697 = vmatprep.subr.bf16.mxu1 %v3165_v56 }
 0x1c6   : > { %1698 = vmatpush1.bf16.msra.mxu1 %v3163_v59 }
 0x1c7   : > { %1699 = vmatprep.subr.bf16.mxu1 %v3168_v16 }
 0x1ca   : > { %1700 = vmatpush1.bf16.msra.mxu1 %v3166_v17 }
 0x1cb   : > { %1701 = vmatprep.subr.bf16.mxu1 %v3171_v60 }
 0x1ce   : > { %1702 = vmatpush1.bf16.msra.mxu1 %v3169_v62 }
 0x1cf   : > { %1703 = vmatprep.subr.bf16.mxu1 %v3174_v63 }
 0x1d2   : > { %1704 = vmatpush1.bf16.msra.mxu1 %v3172_v0 }
 0x1d3   : > { %1705 = vmatprep.subr.bf16.mxu1 %v3177_v25 }
 0x1d6   : > { %1706 = vmatpush1.bf16.msra.mxu1 %v3175_v26 }
 0x1d7   : > { %1707 = vmatprep.subr.bf16.mxu1 %v3180_v1 }
 0x1da   : > { %1708 = vmatpush1.bf16.msra.mxu1 %v3178_v2 }
 0x1db   : > { %1709 = vmatprep.subr.bf16.mxu1 %v3183_v3 }
 0x1de   : > { %1710 = vmatpush1.bf16.msra.mxu1 %v3181_v4 }
 0x1df   : > { %1711 = vmatprep.subr.bf16.mxu1 %v3186_v18 }
 0x1e2   : > { %1712 = vmatpush1.bf16.msra.mxu1 %v3184_v19 }
 0x1e3   : > { %1734 = vmatprep.subr.bf16.mxu1 %v3189_v50 }
 0x1e5   : > { %1714 = vmatmul.mubr.bf16.vlgmr.msra.gmra.mrb[0].mxu1 %v3760_v57  ;;  %v3199_v57 = vld [vmem:[#allocation2 + $0x240] ss:$8 sps:$4 sm:$0xff]  }
 0x1e6   : > { %1723 = vmatprep.mubr.bf16.mxu1 %v3781_v40  ;;  %1735 = vmatpush1.bf16.msra.mxu1 %v3187_v20 }
 0x1e7   : > { %1736 = vmatprep.subr.bf16.mxu1 %v3192_v28 }
 0x1ea   : > { %1737 = vmatpush1.bf16.msra.mxu1 %v3190_v29 }
 0x1eb   : > { %1738 = vmatprep.subr.bf16.mxu1 %v3195_v30 }
 0x1ed   : > { %1724 = vmatmul.mubr.bf16.gmra.mrb[4].mxu1 %v3772_v36  ;;  %v1791_v36 = vsub.s32 0, %v1790_v35 }
 0x1ee   : > { %1739 = vmatpush1.bf16.msra.mxu1 %v3193_v5  ;;  %1766 = vmatprep.mubr.bf16.mxu1 %v3393_v8 }
 0x1ef   : > { %1740 = vmatprep.subr.bf16.mxu1 %v3198_v6  ;;  %v1792_v40 = vrot.slane %v1787_v37, %v1791_v36 }
 0x1f2   : > { %1741 = vmatpush1.bf16.msra.mxu1 %v3196_v7 }
 0x1f3   : > { %1742 = vmatprep.subr.bf16.mxu1 %v3201_v9 }
 0x1f6   : > { %1743 = vmatpush1.bf16.msra.mxu1 %v3199_v57 }
 0x1f7   : > { %1744 = vmatprep.subr.bf16.mxu1 %v3204_v10 }
 0x1fa   : > { %1745 = vmatpush1.bf16.msra.mxu1 %v3202_v11 }
 0x1fb   : > { %1746 = vmatprep.subr.bf16.mxu1 %v3207_v58 }
 0x1fe   : > { %1747 = vmatpush1.bf16.msra.mxu1 %v3205_v13 }
 0x1ff   : > { %1748 = vmatprep.subr.bf16.mxu1 %v3210_v14 }
 0x202   : > { %1749 = vmatpush1.bf16.msra.mxu1 %v3208_v61 }
 0x205   : > { %1767 = vmatmul.mubr.bf16.vlgmr.msra.gmra.mrb[0].mxu1 %v3775_v38  ;;  %v1795_v38 = vsub.s32 1, %v1790_v35  ;;  %v3230_v35 = vld [vmem:[#allocation5 + $0x88] sm:$0xff]  }
 0x206   : > { %1776 = vmatprep.mubr.bf16.mxu1 %v3393_v8 }
 0x207   : > { %v1796_v41 = vrot.slane %v1787_v37, %v1795_v38 }
 0x20d   : > { %1777 = vmatmul.mubr.bf16.gmra.mrb[4].mxu1 %v3778_v39  ;;  %v1807_v39 = vld [vmem:[%s3925_s6] sm:$0x3] }
 0x20e   : > { %v1812_v42 = vrot.slane %v1807_v39, %v1791_v36  ;;  %v1816_v44 = vrot.slane %v1807_v39, %v1795_v38 }
 0x2d8   : > { %v1768_v43 = vpop.f32.mrb[0].mxu1 }
 0x2d9   : > { %v1799_v45 = vmul.f32 %v1792_v40, %v1768_v43  ;;  %v1770_v46 = vpop.f32.mrb[1].mxu1 }
 0x2da   : > { %v1800_v47 = vmul.f32 %v1796_v41, %v1770_v46  ;;  %v1772_v48 = vpop.f32.mrb[2].mxu1 }
 0x2db   : > { %v1819_v49 = vadd.f32 %v1812_v42, %v1799_v45  ;;  %v1801_v51 = vmul.f32 %v1792_v40, %v1772_v48  ;;  %v1774_v52 = vpop.f32.mrb[3].mxu1  ;;  %v3232_v45 = vld [vmem:[#allocation5 + $0x90] sm:$0xff]   ;;  %v3233_v48 = vld [vmem:[#allocation5 + $0xd8] sm:$0xff]  }
 0x2dc   : > { %v1820_v53 = vadd.f32 %v1816_v44, %v1800_v47  ;;  %v1802_v54 = vmul.f32 %v1796_v41, %v1774_v52  ;;  %v3234_v52 = vld [vmem:[#allocation5 + $0x98] sm:$0xff]  }
 0x2dd   : > { %v1821_v55 = vadd.f32 %v1812_v42, %v1801_v51  ;;  %v1827_v59 = vmax.f32 %v1819_v49, 0.0 }
 0x2de   : > { %v1822_v56 = vadd.f32 %v1816_v44, %v1802_v54  ;;  %v1828_v17 = vmax.f32 %v1820_v53, 0.0  ;;  %v3235_v53 = vld [vmem:[#allocation5 + $0xe0] sm:$0xff]  }
 0x2df   : > { %v1829_v16 = vmax.f32 %v1821_v55, 0.0  ;;  %v3236_v54 = vld [vmem:[#allocation5 + $0xa0] sm:$0xff]   ;;  %v3237_v55 = vld [vmem:[#allocation5 + $0xe8] sm:$0xff]  }
 0x2e0   : > { %v1830_v60 = vmax.f32 %v1822_v56, 0.0  ;;  %v1778_v62 = vpop.f32.mrb[4].mxu1  ;;  %v3238_v56 = vld [vmem:[#allocation5 + $0xa8] sm:$0xff]  }
 0x2e1   : > { %v1835_v63 = vpack.c.bf16 %v1829_v16, %v1827_v59  ;;  %v1803_v0 = vmul.f32 %v1792_v40, %v1778_v62  ;;  %v1780_v25 = vpop.f32.mrb[5].mxu1  ;;  %v3239_v59 = vld [vmem:[#allocation5 + $0xf0] sm:$0xff]  }
 0x2e2   : > { %v1836_v26 = vpack.c.bf16 %v1830_v60, %v1828_v17  ;;  %v1804_v1 = vmul.f32 %v1796_v41, %v1780_v25  ;;  %v1782_v2 = vpop.f32.mrb[6].mxu1  ;;  %v3240_v60 = vld [vmem:[#allocation5 + $0xb0] sm:$0xff]  }
 0x2e3   : > { %v1840_v3 = vshrl.u32 %v1835_v63, 16  ;;  %v1823_v4 = vadd.f32 %v1812_v42, %v1803_v0  ;;  %v1805_v18 = vmul.f32 %v1792_v40, %v1782_v2  ;;  %v1784_v19 = vpop.f32.mrb[7].mxu1  ;;  %v1843_v29 = vshll.u32 %v1835_v63, 16  ;;  %v3231_v40 = vld [vmem:[#allocation5 + $0xd0] sm:$0xff]   ;;  %v3241_v63 = vld [vmem:[#allocation5 + $0xf8] sm:$0xff]  }
 0x2e4   : > { %v1847_v50 = vshrl.u32 %v1836_v26, 16  ;;  %v1824_v20 = vadd.f32 %v1816_v44, %v1804_v1  ;;  %v1806_v28 = vmul.f32 %v1796_v41, %v1784_v19  ;;  %v1850_v6 = vshll.u32 %v1836_v26, 16 }
 0x2e5   : > { %v1825_v30 = vadd.f32 %v1812_v42, %v1805_v18  ;;  %v3797_v5 = vrot.slane %v1840_v3, 7  ;;  %v1831_v9 = vmax.f32 %v1823_v4, 0.0  ;;  %v3242_v3 = vld [vmem:[#allocation5 + $0xb8] sm:$0xff]   ;;  %v3243_v18 = vld [vmem:[#allocation5 + $0x140] sm:$0xff]  }
 0x2e6   : > { %v1826_v7 = vadd.f32 %v1816_v44, %v1806_v28  ;;  %v1849_v8 = vrot.slane %v1847_v50, 7  ;;  %v1832_v11 = vmax.f32 %v1824_v20, 0.0 }
 0x2e7   : > { %v1833_v57 = vmax.f32 %v1825_v30, 0.0  ;;  %v1845_v10 = vor.u32 %v1843_v29, %v3797_v5  ;;  %v3838_v62 = vsel %vm3801_vm14, %v3797_v5, 0  ;;  %v3244_v30 = vld [vmem:[#allocation5 + $0x100] sm:$0xff]  }
 0x2e8   : > { %v1834_v58 = vmax.f32 %v1826_v7, 0.0  ;;  %v1852_v13 = vor.u32 %v1850_v6, %v1849_v8  ;;  %v3817_v31 = vsel %vm3801_vm14, %v1849_v8, 0  ;;  %v1894_v2 = vshll.u32 %v3838_v62, 16  ;;  %v3245_v6 = vld [vmem:[#allocation5 + $0x148] sm:$0xff]  }
 0x2e9   : > { %v1837_v61 = vpack.c.bf16 %v1833_v57, %v1831_v9  ;;  %v3813_v27 = vsel %vm3801_vm14, 0, %v1845_v10  ;;  %v1906_v41 = vshll.u32 %v3817_v31, 16 }
 0x2ea   : > { %v1838_v22 = vpack.c.bf16 %v1834_v58, %v1832_v11  ;;  %v3807_v12 = vsel %vm3801_vm14, 0, %v1852_v13  ;;  %v1889_v16 = vshll.u32 %v3813_v27, 16  ;;  %v1887_v1 = vshrl.u32 %v3813_v27, 16  ;;  %v3246_v11 = vld [vmem:[#allocation5 + $0x108] sm:$0xff]   ;;  %v3247_v13 = vld [vmem:[#allocation5 + $0x150] sm:$0xff]  }
 0x2eb   : > { %v1854_v23 = vshrl.u32 %v1837_v61, 16  ;;  %v1901_v24 = vshll.u32 %v3807_v12, 16  ;;  %2378 = vmatprep.mubr.bf16.mxu0 %v3807_v12  ;;  %v1857_v33 = vshll.u32 %v1837_v61, 16  ;;  %v1899_v38 = vshrl.u32 %v3807_v12, 16 }
 0x2ec   : > { %v1861_v32 = vshrl.u32 %v1838_v22, 16  ;;  %2379 = vmatmul.mubr.bf16.vlgmr.msra.gmra.mrb[4].mxu0 %v3813_v27  ;;  %v1864_v37 = vshll.u32 %v1838_v22, 16  ;;  %v1908_v47 = vrot.slane %v1906_v41, 1  ;;  %v1891_v0 = vrot.slane %v1889_v16, 1  ;;  %v3248_v22 = vld [vmem:[#allocation5 + $0x110] sm:$0xff]  }
 0x2ed   : > { %v1903_v34 = vrot.slane %v1901_v24, 1  ;;  %2865 = vmatpush3.bf16.msra.mxu0 %v3228_v21  ;;  %v1856_v36 = vrot.slane %v1854_v23, 7  ;;  %v1896_v29 = vrot.slane %v1894_v2, 1  ;;  %v1949_v21 = vrot.slane %v3807_v12, 1  ;;  %v3249_v23 = vld [vmem:[#allocation5 + $0x158] sm:$0xff]   ;;  %v3253_v12 = vld [vmem:[#allocation5 + $0x168] sm:$0xff]  }
 0x2ee   : > { %2866 = vmatprep.subr.bf16.mxu0 %v3229_v15  ;;  %v1863_v39 = vrot.slane %v1861_v32, 7  ;;  %v1892_v50 = vor.u32 %v1891_v0, %v1887_v1  ;;  %v1950_v15 = vrot.slane %v3817_v31, 1  ;;  %v3256_v31 = vld [vmem:[#allocation5 + $0x130] sm:$0xff]  }
 0x2ef   : > { %v1859_v42 = vor.u32 %v1857_v33, %v1856_v36  ;;  %v1904_v44 = vor.u32 %v1903_v34, %v1899_v38  ;;  %v1884_v7 = vsel %vm3801_vm14, %v1856_v36, 0  ;;  %v3250_v33 = vld [vmem:[#allocation5 + $0x118] sm:$0xff]   ;;  %v3251_v34 = vld [vmem:[#allocation5 + $0x160] sm:$0xff]   ;;  %v3254_v36 = vld [vmem:[#allocation5 + $0x128] sm:$0xff]  }
 0x2f0   : > { %v1866_v43 = vor.u32 %v1864_v37, %v1863_v39  ;;  %v3842_v25 = vsel %vm3801_vm14, %v1863_v39, 0  ;;  %v1897_v9 = vsel %vm434_vm3, %v1892_v50, %v1896_v29  ;;  %v1918_v58 = vshll.u32 %v1884_v7, 16  ;;  %v3255_v37 = vld [vmem:[#allocation5 + $0x170] sm:$0xff]   ;;  %v3257_v38 = vld [vmem:[#allocation5 + $0x178] sm:$0xff]  }
 0x2f1   : > { %2867 = vmatpush3.bf16.msra.mxu0 %v3230_v35  ;;  %v3829_v49 = vsel %vm3801_vm14, 0, %v1859_v42  ;;  %v1909_v51 = vsel %vm434_vm3, %v1904_v44, %v1908_v47  ;;  %v1930_v19 = vshll.u32 %v3842_v25, 16  ;;  %v1951_v32 = vsel %vm584_vm5, %v1949_v21, %v1950_v15  ;;  %v3252_v35 = vld [vmem:[#allocation5 + $0x120] sm:$0xff]   ;;  %v3258_v39 = vld [vmem:[#allocation5 + $0x138] sm:$0xff]  }
 0x2f2   : > { %v3824_v46 = vsel %vm3801_vm14, 0, %v1866_v43  ;;  %2868 = vmatprep.subr.bf16.mxu0 %v3231_v40  ;;  %v1913_v20 = vshll.u32 %v3829_v49, 16  ;;  %v1911_v10 = vshrl.u32 %v3829_v49, 16  ;;  %v1920_v14 = vrot.slane %v1918_v58, 1  ;;  %v2806_v58 = vld [vmem:[%s3928_s9] ss:$0 sm:$0xff] }
 0x2f3   : > { %2386 = vmatprep.mubr.bf16.mxu0 %v3824_v46  ;;  %v1925_v17 = vshll.u32 %v3824_v46, 16  ;;  %v1923_v4 = vshrl.u32 %v3824_v46, 16  ;;  %v1932_v5 = vrot.slane %v1930_v19, 1  ;;  %v1946_v40 = vrot.slane %v3813_v27, 1 }
 0x2f4   : > { %2387 = vmatmul.mubr.bf16.gmra.mrb[8].mxu0 %v3829_v49  ;;  %v1915_v8 = vrot.slane %v1913_v20, 1  ;;  %v1955_v41 = vrot.slane %v3824_v46, 1  ;;  %v1947_v42 = vrot.slane %v3838_v62, 1  ;;  %v1956_v43 = vrot.slane %v3842_v25, 1 }
 0x2f5   : > { %2869 = vmatpush3.bf16.msra.mxu0 %v3232_v45  ;;  %2427 = vmatprep.mubr.bf16.mxu0 %v1909_v51  ;;  %v1927_v26 = vrot.slane %v1925_v17, 1  ;;  %v1952_v47 = vrot.slane %v3829_v49, 1 }
 0x2f6   : > { %2870 = vmatprep.subr.bf16.mxu0 %v3233_v48  ;;  %v1916_v61 = vor.u32 %v1915_v8, %v1911_v10  ;;  %v1948_v44 = vsel %vm584_vm5, %v1946_v40, %v1947_v42  ;;  %v1957_v45 = vsel %vm584_vm5, %v1955_v41, %v1956_v43  ;;  %v1953_v48 = vrot.slane %v1884_v7, 1 }
 0x2f7   : > { %v1928_v28 = vor.u32 %v1927_v26, %v1923_v4 }
 0x2f8   : > { %v1921_v24 = vsel %vm434_vm3, %v1916_v61, %v1920_v14  ;;  %v1954_v51 = vsel %vm584_vm5, %v1952_v47, %v1953_v48 }
 0x2f9   : > { %2871 = vmatpush3.bf16.msra.mxu0 %v3234_v52  ;;  %v1933_v57 = vsel %vm434_vm3, %v1928_v28, %v1932_v5 }
 0x2fa   : > { %2872 = vmatprep.subr.bf16.mxu0 %v3235_v53 }
 0x2fd   : > { %2873 = vmatpush3.bf16.msra.mxu0 %v3236_v54 }
 0x2fe   : > { %2874 = vmatprep.subr.bf16.mxu0 %v3237_v55 }
 0x301   : > { %2875 = vmatpush3.bf16.msra.mxu0 %v3238_v56 }
 0x302   : > { %2876 = vmatprep.subr.bf16.mxu0 %v3239_v59 }
 0x305   : > { %2877 = vmatpush3.bf16.msra.mxu0 %v3240_v60 }
 0x306   : > { %2878 = vmatprep.subr.bf16.mxu0 %v3241_v63 }
 0x309   : > { %2879 = vmatpush3.bf16.msra.mxu0 %v3242_v3 }
 0x30a   : > { %2892 = vmatprep.subr.bf16.mxu0 %v3243_v18 }
 0x30c   : > { %2428 = vmatmul.mubr.bf16.vlgmr.msra.gmra.mrb[12].mxu0 %v1897_v9  ;;  %v2805_v9 = vld [vmem:[%s3927_s8] ss:$0 sm:$0xff] }
 0x30d   : > { %2435 = vmatprep.mubr.bf16.mxu0 %v1933_v57  ;;  %2893 = vmatpush3.bf16.msra.mxu0 %v3244_v30 }
 0x30e   : > { %2894 = vmatprep.subr.bf16.mxu0 %v3245_v6 }
 0x311   : > { %2895 = vmatpush3.bf16.msra.mxu0 %v3246_v11 }
 0x312   : > { %2896 = vmatprep.subr.bf16.mxu0 %v3247_v13 }
 0x314   : > { %2436 = vmatmul.mubr.bf16.gmra.mrb[16].mxu0 %v1921_v24 }
 0x315   : > { %2897 = vmatpush3.bf16.msra.mxu0 %v3248_v22  ;;  %2476 = vmatprep.mubr.bf16.mxu0 %v1951_v32 }
 0x316   : > { %2898 = vmatprep.subr.bf16.mxu0 %v3249_v23 }
 0x319   : > { %2899 = vmatpush3.bf16.msra.mxu0 %v3250_v33 }
 0x31a   : > { %2900 = vmatprep.subr.bf16.mxu0 %v3251_v34 }
 0x31d   : > { %2901 = vmatpush3.bf16.msra.mxu0 %v3252_v35 }
 0x31e   : > { %2902 = vmatprep.subr.bf16.mxu0 %v3253_v12 }
 0x321   : > { %2903 = vmatpush3.bf16.msra.mxu0 %v3254_v36 }
 0x322   : > { %2904 = vmatprep.subr.bf16.mxu0 %v3255_v37 }
 0x325   : > { %2905 = vmatpush3.bf16.msra.mxu0 %v3256_v31 }
 0x326   : > { %2906 = vmatprep.subr.bf16.mxu0 %v3257_v38 }
 0x329   : > { %2907 = vmatpush3.bf16.msra.mxu0 %v3258_v39 }
 0x32c   : > { %2477 = vmatmul.mubr.bf16.vlgmr.msra.gmra.mrb[20].mxu0 %v1948_v44 }
 0x32d   : > { %2484 = vmatprep.mubr.bf16.mxu0 %v1957_v45 }
 0x334   : > { %2485 = vmatmul.mubr.bf16.gmra.mrb[24].mxu0 %v1954_v51 }
 0x3bf   : > { %v2852_v27 = vpop.f32.mrb[4].mxu0 }
 0x3c0   : > { %v2853_v52 = vpop.f32.mrb[5].mxu0 }
 0x3c1   : > { %v2854_v46 = vadd.f32 %v2853_v52, %v2852_v27  ;;  %v2855_v53 = vpop.f32.mrb[6].mxu0 }
 0x3c2   : > { %v2856_v54 = vpop.f32.mrb[7].mxu0 }
 0x3c3   : > { %v2857_v55 = vadd.f32 %v2856_v54, %v2855_v53 }
 0x3c7   : > { %v2858_v56 = vpop.f32.mrb[8].mxu0 }
 0x3c8   : > { %v2859_v59 = vpop.f32.mrb[9].mxu0 }
 0x3c9   : > { %v2860_v16 = vadd.f32 %v2859_v59, %v2858_v56  ;;  %v2861_v17 = vpop.f32.mrb[10].mxu0 }
 0x3ca   : > { %v2862_v60 = vpop.f32.mrb[11].mxu0 }
 0x3cb   : > { %v2863_v62 = vadd.f32 %v2862_v60, %v2861_v17 }
 0x3df   : > { %v2880_v63 = vpop.f32.mrb[12].mxu0 }
 0x3e0   : > { %v2881_v0 = vpop.f32.mrb[13].mxu0 }
 0x3e1   : > { %v2882_v25 = vadd.f32 %v2881_v0, %v2880_v63  ;;  %v2883_v49 = vpop.f32.mrb[14].mxu0 }
 0x3e2   : > { %v2884_v26 = vpop.f32.mrb[15].mxu0 }
 0x3e3   : > { %v2430_v1 = vadd.f32 %v2882_v25, %v2854_v46  ;;  %v2885_v2 = vadd.f32 %v2884_v26, %v2883_v49 }
 0x3e5   : > { %v2433_v3 = vadd.f32 %v2885_v2, %v2857_v55 }
 0x3e7   : > { %v2886_v4 = vpop.f32.mrb[16].mxu0 }
 0x3e8   : > { %v2887_v18 = vpop.f32.mrb[17].mxu0 }
 0x3e9   : > { %v2888_v19 = vadd.f32 %v2887_v18, %v2886_v4  ;;  %v2889_v50 = vpop.f32.mrb[18].mxu0 }
 0x3ea   : > { %v2890_v20 = vpop.f32.mrb[19].mxu0 }
 0x3eb   : > { %v2438_v28 = vadd.f32 %v2888_v19, %v2860_v16  ;;  %v2891_v29 = vadd.f32 %v2890_v20, %v2889_v50 }
 0x3ed   : > { %v2441_v30 = vadd.f32 %v2891_v29, %v2863_v62 }
 0x3ff   : > { %v2908_v5 = vpop.f32.mrb[20].mxu0 }
 0x400   : > { %v2909_v6 = vpop.f32.mrb[21].mxu0 }
 0x401   : > { %v2910_v7 = vadd.f32 %v2909_v6, %v2908_v5  ;;  %v2911_v8 = vpop.f32.mrb[22].mxu0 }
 0x402   : > { %v2912_v57 = vpop.f32.mrb[23].mxu0 }
 0x403   : > { %v2479_v10 = vadd.f32 %v2910_v7, %v2430_v1  ;;  %v2913_v11 = vadd.f32 %v2912_v57, %v2911_v8 }
 0x405   : > { %v2500_v13 = vmul.f32 %v2805_v9, %v2479_v10  ;;  %v2482_v61 = vadd.f32 %v2913_v11, %v2433_v3 }
 0x407   : > { %v2511_v21 = vadd.f32 %v2806_v58, %v2500_v13  ;;  %v2501_v14 = vmul.f32 %v2805_v9, %v2482_v61  ;;  %v2914_v22 = vpop.f32.mrb[24].mxu0 }
 0x408   : > { %v2915_v15 = vpop.f32.mrb[25].mxu0 }
 0x409   : > { %v2512_v23 = vadd.f32 %v2806_v58, %v2501_v14  ;;  %v2916_v24 = vadd.f32 %v2915_v15, %v2914_v22  ;;  %v2917_v32 = vpop.f32.mrb[26].mxu0  ;;  %v2515_v34 = vmax.f32 %v2511_v21, 0.0 }
 0x40a   : > { %v2918_v33 = vpop.f32.mrb[27].mxu0 }
 0x40b   : > { %v2516_v35 = vmax.f32 %v2512_v23, 0.0  ;;  %v2487_v12 = vadd.f32 %v2916_v24, %v2438_v28  ;;  %v2919_v36 = vadd.f32 %v2918_v33, %v2917_v32 }
 0x40d   : > { %v2519_v37 = vadd.f32 %v2516_v35, %v2515_v34  ;;  %v2502_v31 = vmul.f32 %v2805_v9, %v2487_v12  ;;  %v2490_v38 = vadd.f32 %v2919_v36, %v2441_v30 }
 0x40f   : > { %v2520_v39 = vrot.slane %v2519_v37, 4  ;;  %v2513_v40 = vadd.f32 %v2806_v58, %v2502_v31  ;;  %v2503_v41 = vmul.f32 %v2805_v9, %v2490_v38 }
 0x411   : > { %v2521_v42 = vadd.f32 %v2520_v39, %v2519_v37  ;;  %v2514_v43 = vadd.f32 %v2806_v58, %v2503_v41  ;;  %v2517_v45 = vmax.f32 %v2513_v40, 0.0 }
 0x413   : > { %v2522_v44 = vrot.slane %v2521_v42, 2  ;;  %v2518_v47 = vmax.f32 %v2514_v43, 0.0 }
 0x415   : > { %v2526_v48 = vadd.f32 %v2518_v47, %v2517_v45  ;;  %v2523_v51 = vadd.f32 %v2522_v44, %v2521_v42 }
 0x417   : > { %v2527_v27 = vrot.slane %v2526_v48, 4  ;;  %v2524_v53 = vrot.slane %v2523_v51, 1 }
 0x419   : > { %v2528_v52 = vadd.f32 %v2527_v27, %v2526_v48  ;;  %v2525_v55 = vadd.f32 %v2524_v53, %v2523_v51 }
 0x41b   : > { %v2529_v46 = vrot.slane %v2528_v52, 2  ;;  %v2534_v16 = vmul.f32 0.0625, %v2525_v55 }
 0x41d   : > { %v2530_v54 = vadd.f32 %v2529_v46, %v2528_v52 }
 0x41f   : > { %v2531_v56 = vrot.slane %v2530_v54, 1 }
 0x421   : > { %v2532_v59 = vadd.f32 %v2531_v56, %v2530_v54 }
 0x423   : > { %v2535_v17 = vmul.f32 0.0625, %v2532_v59 }
 0x425   : > { %v2539_v60 = vsel %vm2538_vm15, %v2535_v17, %v2534_v16 }
 0x426   : > { %2541 = vst [vmem:[%s385_s20] sm:$0x3] %v2539_v60 }
 0x427   : > { %3328 = shalt.err (!%p3325_p11)
}
 0x428   : > { %s3329_s28 = scalar_lea.hbm %s3877_s27, 32  ;;  %s3333_s12 = scalar_lea.hbm %s3929_s10, 96 }
 0x429   : > { %p3330_p13 = scmp.ne.s32.totalorder %s3877_s27, %s3329_s28  ;;  %p3334_p6 = scmp.lt.u32.totalorder %s3877_s27, %s3929_s10 }
 0x42a   : > { %p3335_p9 = scmp.lt.u32.totalorder %s3333_s12, %s3329_s28  ;;  %p3337_p12 = scmp.lt.u32.totalorder %s3329_s28, %s3877_s27 }
 0x42b   : > { %p3331_p0 = pnand %p3330_p13, %p3956_p1 }
 0x42c   : > { %p3336_p10 = por %p3335_p9, %p3334_p6 }
 0x42d   : > { %p3332_p5 = pneg %p3331_p0 }
 0x42e   : > { %p3338_p2 = por %p3337_p12, %p3336_p10 }
 0x430   : > { %p3339_p3 = pnand %p3338_p2, %p3332_p5 }
 0x432   : > { %3342 = shalt.err (!%p3339_p3)
}
 0x433   : > { %3028 = dma.vmem_to_hbm [thread:$0]  (%p3956_p1), %s3879_s21, 32, %s3877_s27, %s2543_s15  }
 0x434 PF: > { %s3957_s20 = sld [smem:[#allocation14_spill]]  ;;  %p3045_p4 = scmp.ge.s32.totalorder %s3385_s16, 2 }
 0x435   : > { %s2568_s26 = sand.u32 1, %s3373_s13  }
 0x436   : > { %s2569_s29 = scalar_lea.sflag [#allocation4], %s2568_s26 }
 0x43a   : > { %p3958_p7 = scmp.ne.s32.totalorder %s3957_s20, 0 }
 0x43c   : > { %p3038_p8 = pnand %p3045_p4, %p3958_p7 }
 0x43e   : > { %3368 = dma.done.wait (!%p3038_p8), %s2569_s29, 32  }
 0x43f   : > { %3370 = vsyncadd (!%p3038_p8), %s2569_s29, 4294967264  ;;  %s3959_s16 = sld [smem:[#allocation12_spill]]  ;;  %s3960_s19 = sld [smem:[#allocation11_spill]] }
 0x440   : > { %s3961_s15 = sld [smem:[#allocation13_spill]]  ;;  %s3962_s13 = smov %s3377_s14 }
 0x445   : > { %p22_p11 = scmp.ge.s32.totalorder %s3959_s16, 5   ;;  %s3963_s14 = smov %s3960_s19 }
 0x447   :  { %24 = sbr.rel (!%p22_p11) target bundleno = 5 (0x5), region = 104 }
 0x44e   :  { %2574 = vsyncpa [#allocation3], 1 }
 0x44f   :  { %2576 = vsyncpa [#allocation3 + $0x1], 1 }
 0x450   :  { %2577 = vsyncpa [#allocation6], 1 }
 0x451   :  { %2578 = vsyncpa [#allocation4], 1 }
 0x452   :  { %2580 = vsyncpa [#allocation4 + $0x1], 1 }

</bundles_post_ra>
